<compile_context>
chip_gen: v7x
topology: tpu7x:2x2x1
jax: 0.10.0
libtpu: 0.0.40
codegen_flags: <defaults>
</compile_context>

<pallas_src>
import jax
import jax.numpy as jnp
from jax.experimental import pallas as pl
from jax.experimental.pallas import tpu as pltpu

LATENT_DIM = 512
HIDDEN_DIM = 1024


def latent_diffusion_kernel(x_ref, w1_ref, b1_ref, w2_ref, b2_ref, o_ref):
    # x_ref:  (TM, 512)  f32       w1_ref: (512, 1024) bf16    b1_ref: (1, 1024) f32
    # w2_ref: (1024, 512) bf16     b2_ref: (1, 512)    f32     o_ref:  (TM, 512) f32/bf16
    # In-kernel downcast of x: free VPU filler under the MXU-bound loop, halves x DMA.
    x = x_ref[...].astype(jnp.bfloat16)

    # Linear 1 on the MXU (bf16 x bf16 -> f32 accumulate).
    h = jnp.dot(x, w1_ref[...], preferred_element_type=jnp.float32)
    # Bias + ReLU in f32 on the VPU (safe on v5e which lacks bf16 VALU), then downcast
    # the hidden activation for the second MXU pass.
    h = jnp.maximum(h + b1_ref[...], 0.0).astype(jnp.bfloat16)

    # Linear 2 on the MXU, bias in f32.
    y = jnp.dot(h, w2_ref[...], preferred_element_type=jnp.float32) + b2_ref[...]
    o_ref[...] = y.astype(o_ref.dtype)


def _round_up(n, m):
    return (n + m - 1) // m * m


def _choose_tile(batch, tm):
    """Pick the batch tile: <= tm, multiple of 16 (bf16 sublane packing), multiple of
    256 when large (full MXU M tiles on v6e/v7x), and small enough that the grid has
    >= 2 steps for non-tiny batches so both v7x TensorCores stay busy."""
    if batch >= 32:
        cap = _round_up(pl.cdiv(batch, 2), 16)   # guarantees grid >= 2 steps
    else:
        cap = _round_up(batch, 16)
    tm_eff = min(tm, cap)
    if tm_eff >= 256:
        tm_eff = (tm_eff // 256) * 256
    else:
        tm_eff = _round_up(tm_eff, 16)
    return max(tm_eff, 16)


def latent_diffusion(x, w1, b1, w2, b2, *, tm=1024, out_dtype=jnp.float32):
    """y = relu(x @ w1 + b1) @ w2 + b2.

    x  : (B, 512)  float32 (cast to bf16 inside the kernel)
    w1 : (512, 1024), w2: (1024, 512)  -- pre-transposed from torch's (out, in),
         ideally already bf16 (init_params does this); biases (1, 1024) / (1, 512) f32.
    Returns (B, 512) in out_dtype (f32 default, like the original nn.Module).
    """
    B, D = x.shape
    assert D == LATENT_DIM
    assert tm % 16 == 0, "tm must be a multiple of 16 (bf16 sublane packing)"

    # Pre-cast weights only if the caller didn't (init_params stores them bf16 already).
    w1_bf = w1 if w1.dtype == jnp.bfloat16 else w1.astype(jnp.bfloat16)
    w2_bf = w2 if w2.dtype == jnp.bfloat16 else w2.astype(jnp.bfloat16)
    b1_f = b1 if b1.dtype == jnp.float32 else b1.astype(jnp.float32)
    b2_f = b2 if b2.dtype == jnp.float32 else b2.astype(jnp.float32)

    tm_eff = _choose_tile(B, tm)
    grid = (pl.cdiv(B, tm_eff),)   # ragged last tile handled by Pallas clipping/masking

    flops = 2 * B * (LATENT_DIM * HIDDEN_DIM + HIDDEN_DIM * LATENT_DIM)
    bytes_accessed = (
        x.size * x.dtype.itemsize                       # x read as-is (f32)
        + w1_bf.size * 2 + w2_bf.size * 2               # bf16 weights
        + b1_f.size * 4 + b2_f.size * 4                 # f32 biases
        + B * LATENT_DIM * jnp.dtype(out_dtype).itemsize  # output
    )

    resident = pl.Buffered(1)   # constant index_map -> no double buffering needed

    out = pl.pallas_call(
        latent_diffusion_kernel,
        out_shape=jax.ShapeDtypeStruct((B, LATENT_DIM), out_dtype),
        grid_spec=pl.GridSpec(
            grid=grid,
            in_specs=[
                pl.BlockSpec((tm_eff, LATENT_DIM), lambda i: (i, 0)),          # x tile
                pl.BlockSpec((LATENT_DIM, HIDDEN_DIM), lambda i: (0, 0),
                             pipeline_mode=resident),                          # W1 (resident)
                pl.BlockSpec((1, HIDDEN_DIM), lambda i: (0, 0),
                             pipeline_mode=resident),                          # b1
                pl.BlockSpec((HIDDEN_DIM, LATENT_DIM), lambda i: (0, 0),
                             pipeline_mode=resident),                          # W2 (resident)
                pl.BlockSpec((1, LATENT_DIM), lambda i: (0, 0),
                             pipeline_mode=resident),                          # b2
            ],
            out_specs=pl.BlockSpec((tm_eff, LATENT_DIM), lambda i: (i, 0)),
        ),
        compiler_params=pltpu.CompilerParams(
            dimension_semantics=("parallel",),
            vmem_limit_bytes=32 * 1024 * 1024,
        ),
        cost_estimate=pl.CostEstimate(
            flops=flops, transcendentals=0, bytes_accessed=bytes_accessed),
    )(x, w1_bf, b1_f, w2_bf, b2_f)

    return out


def init_params(key):
    """Deterministic init mimicking nn.Linear default (uniform +-1/sqrt(fan_in)),
    weights pre-transposed to (in, out) and stored in bf16 once (MXU input dtype)."""
    k1, k2, k3, k4 = jax.random.split(key, 4)
    bound1 = 1.0 / (LATENT_DIM ** 0.5)
    bound2 = 1.0 / (HIDDEN_DIM ** 0.5)
    w1 = jax.random.uniform(k1, (LATENT_DIM, HIDDEN_DIM), jnp.float32, -bound1, bound1)
    b1 = jax.random.uniform(k2, (1, HIDDEN_DIM), jnp.float32, -bound1, bound1)
    w2 = jax.random.uniform(k3, (HIDDEN_DIM, LATENT_DIM), jnp.float32, -bound2, bound2)
    b2 = jax.random.uniform(k4, (1, LATENT_DIM), jnp.float32, -bound2, bound2)
    return w1.astype(jnp.bfloat16), b1, w2.astype(jnp.bfloat16), b2


def reference_f32(x, w1, b1, w2, b2):
    h = jnp.maximum(x @ w1.astype(jnp.float32) + b1, 0.0)
    return h @ w2.astype(jnp.float32) + b2


def reference_bf16(x, w1_bf, b1, w2_bf, b2):
    """Mirrors the kernel's dtype path: bf16 MXU inputs, f32 accumulation/epilogue."""
    xb = x.astype(jnp.bfloat16)
    h = jnp.dot(xb, w1_bf, preferred_element_type=jnp.float32) + b1
    h = jnp.maximum(h, 0.0).astype(jnp.bfloat16)
    return jnp.dot(h, w2_bf, preferred_element_type=jnp.float32) + b2


if __name__ == "__main__":
    key = jax.random.PRNGKey(0)
    kx, kp = jax.random.split(key)

    # Small demo: B=40 with tm=16 gives a 3-step grid whose last tile is ragged
    # (exercises the no-pad clipping path). Production default is tm=1024.
    B = 40
    x = jax.random.normal(kx, (B, LATENT_DIM), jnp.float32)
    w1, b1, w2, b2 = init_params(kp)

    out = latent_diffusion(x, w1, b1, w2, b2, tm=16)
    out = jax.block_until_ready(out)
    assert out.shape == (B, LATENT_DIM)
    assert out.dtype == jnp.float32

    # Tight check against a reference that mirrors the kernel's bf16/f32 dtype path.
    ref_bf = reference_bf16(x, w1, b1, w2, b2)
    assert jnp.allclose(out, ref_bf, atol=1e-2, rtol=1e-2)

    # Loose sanity check against the pure-f32 reference (bf16 quantization noise).
    ref_f32 = reference_f32(x, w1, b1, w2, b2)
    assert jnp.allclose(out, ref_f32, atol=5e-2, rtol=5e-2)

    print("KERNEL_OK")
</pallas_src>

<mosaic_0001>
module attributes {stable_mosaic.version = 11 : i64} {
  func.func @latent_diffusion_kernel(%arg0: i32, %arg1: memref<16x512xf32, #tpu.memory_space<vmem>>, %arg2: memref<512x1024xbf16, #tpu.memory_space<vmem>>, %arg3: memref<1x1024xf32, #tpu.memory_space<vmem>>, %arg4: memref<1024x512xbf16, #tpu.memory_space<vmem>>, %arg5: memref<1x512xf32, #tpu.memory_space<vmem>>, %arg6: memref<16x512xf32, #tpu.memory_space<vmem>>) attributes {dimension_semantics = [#tpu.dimension_semantics<parallel>], iteration_bounds = array<i64: 3>, scalar_prefetch = 0 : i64, scratch_operands = 0 : i64, tpu.core_type = #tpu.core_type<tc>, window_params = [{transform_indices = @transform_0, window_bounds = array<i64: 16, 512>}, {pipeline_mode = #tpu.pipeline_mode<synchronous>, transform_indices = @transform_1, window_bounds = array<i64: 512, 1024>}, {pipeline_mode = #tpu.pipeline_mode<synchronous>, transform_indices = @transform_2, window_bounds = array<i64: 1, 1024>}, {pipeline_mode = #tpu.pipeline_mode<synchronous>, transform_indices = @transform_3, window_bounds = array<i64: 1024, 512>}, {pipeline_mode = #tpu.pipeline_mode<synchronous>, transform_indices = @transform_4, window_bounds = array<i64: 1, 512>}, {transform_indices = @transform_5, window_bounds = array<i64: 16, 512>}]} {
    %c0 = arith.constant 0 : index
    %c0_0 = arith.constant 0 : index
    %0 = vector.load %arg1[%c0, %c0_0] : memref<16x512xf32, #tpu.memory_space<vmem>>, vector<16x512xf32>
    %1 = arith.truncf %0 : vector<16x512xf32> to vector<16x512xbf16>
    %c0_1 = arith.constant 0 : index
    %c0_2 = arith.constant 0 : index
    %2 = vector.load %arg2[%c0_1, %c0_2] : memref<512x1024xbf16, #tpu.memory_space<vmem>>, vector<512x1024xbf16>
    %cst = arith.constant dense<0.000000e+00> : vector<16x1024xf32>
    %3 = tpu.matmul %1, %2, %cst {dimension_numbers = #tpu.dot_dimension_numbers<[1], [0], [0], [1], [0, 0, 1, 1], [], []>} : vector<16x512xbf16>, vector<512x1024xbf16>, vector<16x1024xf32> -> vector<16x1024xf32>
    %c0_3 = arith.constant 0 : index
    %c0_4 = arith.constant 0 : index
    %4 = vector.load %arg3[%c0_3, %c0_4] : memref<1x1024xf32, #tpu.memory_space<vmem>>, vector<1x1024xf32>
    %5 = vector.broadcast %4 : vector<1x1024xf32> to vector<16x1024xf32>
    %6 = arith.addf %3, %5 : vector<16x1024xf32>
    %cst_5 = arith.constant 0.000000e+00 : f32
    %7 = vector.broadcast %cst_5 : f32 to vector<16x1024xf32>
    %8 = arith.maximumf %6, %7 : vector<16x1024xf32>
    %9 = arith.truncf %8 : vector<16x1024xf32> to vector<16x1024xbf16>
    %c0_6 = arith.constant 0 : index
    %c0_7 = arith.constant 0 : index
    %10 = vector.load %arg4[%c0_6, %c0_7] : memref<1024x512xbf16, #tpu.memory_space<vmem>>, vector<1024x512xbf16>
    %cst_8 = arith.constant dense<0.000000e+00> : vector<16x512xf32>
    %11 = tpu.matmul %9, %10, %cst_8 {dimension_numbers = #tpu.dot_dimension_numbers<[1], [0], [0], [1], [0, 0, 1, 1], [], []>} : vector<16x1024xbf16>, vector<1024x512xbf16>, vector<16x512xf32> -> vector<16x512xf32>
    %c0_9 = arith.constant 0 : index
    %c0_10 = arith.constant 0 : index
    %12 = vector.load %arg5[%c0_9, %c0_10] : memref<1x512xf32, #tpu.memory_space<vmem>>, vector<1x512xf32>
    %13 = vector.broadcast %12 : vector<1x512xf32> to vector<16x512xf32>
    %14 = arith.addf %11, %13 : vector<16x512xf32>
    %c0_11 = arith.constant 0 : index
    %c0_12 = arith.constant 0 : index
    %15 = vector.load %arg6[%c0_11, %c0_12] : memref<16x512xf32, #tpu.memory_space<vmem>>, vector<16x512xf32>
    tpu.vector_store %arg6[%c0_11, %c0_12], %14 {strides = array<i32>} : memref<16x512xf32, #tpu.memory_space<vmem>>, vector<16x512xf32>,
    return
  }
  func.func @transform_0(%arg0: i32) -> (i32, i32) {
    %c0_i32 = arith.constant 0 : i32
    %c0_i32_0 = arith.constant 0 : i32
    return %arg0, %c0_i32 : i32, i32
  }
  func.func @transform_1(%arg0: i32) -> (i32, i32) {
    %c0_i32 = arith.constant 0 : i32
    %c0_i32_0 = arith.constant 0 : i32
    %c0_i32_1 = arith.constant 0 : i32
    return %c0_i32, %c0_i32_0 : i32, i32
  }
  func.func @transform_2(%arg0: i32) -> (i32, i32) {
    %c0_i32 = arith.constant 0 : i32
    %c0_i32_0 = arith.constant 0 : i32
    %c0_i32_1 = arith.constant 0 : i32
    return %c0_i32, %c0_i32_0 : i32, i32
  }
  func.func @transform_3(%arg0: i32) -> (i32, i32) {
    %c0_i32 = arith.constant 0 : i32
    %c0_i32_0 = arith.constant 0 : i32
    %c0_i32_1 = arith.constant 0 : i32
    return %c0_i32, %c0_i32_0 : i32, i32
  }
  func.func @transform_4(%arg0: i32) -> (i32, i32) {
    %c0_i32 = arith.constant 0 : i32
    %c0_i32_0 = arith.constant 0 : i32
    %c0_i32_1 = arith.constant 0 : i32
    return %c0_i32, %c0_i32_0 : i32, i32
  }
  func.func @transform_5(%arg0: i32) -> (i32, i32) {
    %c0_i32 = arith.constant 0 : i32
    %c0_i32_0 = arith.constant 0 : i32
    return %arg0, %c0_i32 : i32, i32
  }
}

</mosaic_0001>

<bundles_post_ra>
// kernel: tpu_custom_call.1
= control target key start
LH: loop header
LB: loop body
LE: loop exit
PB: predicated region body
PF: predicated region fallthrough
CT: control target
= control target key end

     0   :  { %10 = vsyncpa [#allocation3], 0  ;;  %s5953_s0 = inlined_call_operand.hbm [shape: f32[40,512], index: 0, kind: input, shape index: {}]   ;;  %s5954_s1 = inlined_call_operand.hbm [shape: bf16[512,1024], index: 1, kind: input, shape index: {}]   ;;  %s5955_s2 = inlined_call_operand.hbm [shape: f32[1,1024], index: 2, kind: input, shape index: {}]   ;;  %s5956_s3 = inlined_call_operand.hbm [shape: bf16[1024,512], index: 3, kind: input, shape index: {}]   ;;  %s5957_s4 = inlined_call_operand.vmem [shape: f32[1,512], index: 4, kind: input, shape index: {}]   ;;  %s5958_s5 = inlined_call_operand.hbm [shape: f32[40,512], index: 5, kind: output, shape index: {}]  }
   0x1   :  { %12 = vsyncpa [#allocation3 + $0x1], 0 }
   0x2   :  { %13 = vsyncpa [#allocation6], 0 }
   0x3   :  { %14 = vsyncpa [#allocation9], 0 }
   0x4   :  { %15 = vsyncpa [#allocation4], 0 }
   0x5   :  { %17 = vsyncpa [#allocation4 + $0x1], 0  ;;  %s5604_s18 = smov 0   ;;  %s5606_s19 = smov 0  }
   0x6   :  { %s5608_s20 = smov 0   ;;  %s5610_s21 = smov 0  }
   0x7 LB: > { %s5625_s22 = sadd.s32 4294967295, %s5559_s21   ;;  %s4297_s23 = sadd.s32 4294967294, %s5559_s21   ;;  %s5559_s21 = sphi %s5610_s21, %s5982_s21   ;;  %s5555_s20 = sphi %s5608_s20, %s5986_s20   ;;  %s5551_s19 = sphi %s5606_s19, %s5985_s19   ;;  %s5547_s18 = sphi %s5604_s18, %s5984_s18  }
   0x8   : > { %s5629_s24 = sadd.s32 1, %s5559_s21   ;;  %s30_s25 = sadd.s32 1, %s5555_s20 }
   0x9   : > { %5964 = sst [smem:[#allocation15_spill]] %s5629_s24  ;;  %s27_s26 = ssub.s32 %s5559_s21, %s5629_s24 }
   0xa   : > { %p37_p0 = scmp.ne.s32.totalorder %s5555_s20, %s5551_s19  ;;  %p28_p1 = scmp.eq.s32.totalorder %s27_s26, 0 }
   0xb   : > { %p38_p2 = scmp.eq.s32.totalorder %s5559_s21, 0  ;;  %p43_p3 = scmp.ne.s32.totalorder %s5551_s19, %s5547_s18 }
   0xc   : > { %p5959_p4 = scmp.eq.s32.totalorder %s5625_s22, 0  ;;  %p151_p7 = scmp.eq.s32.totalorder %s5625_s22, 2 }
   0xd   : > { %s5641_s27 = scalar_select %p28_p1, %s5555_s20, %s30_s25  }
   0xe   : > { %p5643_p5 = por %p38_p2, %p37_p0  ;;  %p5649_p6 = por %p5959_p4, %p43_p3 }
   0xf   : > { %5965 = sst [smem:[#allocation16_spill]] %s5641_s27  ;;  %p157_p8 = scmp.eq.s32.totalorder %s4297_s23, 2 }
  0x10   : > { %s5966_s28 = scalar_select %p5643_p5, 1, 0 }
  0x11   : > { %s5967_s29 = scalar_select %p5649_p6, 1, 0 }
  0x12   : > { %p4298_p9 = scmp.ge.s32.totalorder %s5559_s21, 1  ;;  %p164_p10 = scmp.lt.s32.totalorder %s5559_s21, 4 }
  0x13   : > { %p5656_p11 = por %p151_p7, %p37_p0  ;;  %p5660_p12 = por %p157_p8, %p43_p3 }
  0x14   : > { %p5664_p13 = pnand %p4298_p9, %p164_p10  ;;  %s5561_s8 = smov [#allocation5]  }
  0x15   : > { %s5968_s30 = scalar_select %p5656_p11, 1, 0 }
  0x16   : > { %s5969_s6 = scalar_select %p5660_p12, 1, 0 }
  0x17   : > { %s5970_s7 = scalar_select %p5664_p13, 1, 0 }
  0x18   : > { %p4925_p1 = pneg %p5664_p13  ;;  %s176_s9 = sshll.u32 %s5561_s8, 4  ;;  %s177_s9 = int_to_ptr.vmem [resolvable:$true] %s176_s9 }
  0x19   : > { %s5562_s11 = smov [#allocation7]   ;;  %s5373_s15 = scalar_lea.hbm %s5954_s1, 32768 }
  0x1a   : > { %p5672_p2 = pnand %p4925_p1, %p5959_p4  ;;  %s190_s12 = sshll.u32 %s5562_s11, 4  ;;  %s5676_s12 = int_to_ptr.vmem [resolvable:$true] %s190_s12 }
  0x1b   : > { %p5374_p0 = scmp.ne.s32.totalorder %s5954_s1, %s5373_s15  ;;  %p5380_p9 = scmp.lt.u32.totalorder %s5373_s15, %s5954_s1 }
  0x1c   : > { %p5686_p3 = pneg %p5672_p2 }
  0x1e   : > { %p5376_p7 = pnand %p5686_p3, %p5374_p0 }
  0x20   : > { %p5377_p8 = pneg %p5376_p7 }
  0x22   : > { %p5382_p10 = pnand %p5380_p9, %p5377_p8 }
  0x24   : > { %5385 = shalt.err (!%p5382_p10)
}
  0x25   : > { %s5386_s8 = scalar_lea.vmem %s177_s9, 32768  ;;  %p5394_p11 = scmp.lt.s32.totalorder %s177_s9, %s177_s9 }
  0x26   : > { %p5387_p1 = scmp.ne.s32.totalorder %s177_s9, %s5386_s8  ;;  %p5395_p6 = scmp.lt.s32.totalorder %s5386_s8, %s5386_s8 }
  0x28   : > { %p5389_p4 = pnand %p5387_p1, %p5686_p3  ;;  %p5396_p13 = por %p5395_p6, %p5394_p11 }
  0x2a   : > { %p5390_p12 = pneg %p5389_p4 }
  0x2c   : > { %p5397_p5 = pnand %p5396_p13, %p5390_p12 }
  0x2e   : > { %5400 = shalt.err (!%p5397_p5)
}
  0x2f   : > { %s5563_s11 = smov 512   ;;  %s5564_s13 = smov 32  }
  0x30   : > { %4928 = dma.hbm_to_vmem [thread:$0]  (!%p5672_p2), %s5954_s1, 32768, %s177_s9, [#allocation6], %s5563_s11, %s5563_s11, %s5564_s13  }
  0x31   : > { %s5401_s25 = scalar_lea.hbm %s5955_s2, 128 }
  0x32   : > { %p5402_p4 = scmp.ne.s32.totalorder %s5955_s2, %s5401_s25  ;;  %p5408_p11 = scmp.lt.u32.totalorder %s5401_s25, %s5955_s2 }
  0x34   : > { %p5404_p6 = pnand %p5402_p4, %p5686_p3 }
  0x36   : > { %p5405_p5 = pneg %p5404_p6 }
  0x38   : > { %p5410_p12 = pnand %p5408_p11, %p5405_p5 }
  0x3a   : > { %5413 = shalt.err (!%p5410_p12)
}
  0x3b   : > { %s5414_s9 = scalar_lea.vmem %s5676_s12, 128  ;;  %p5422_p8 = scmp.lt.s32.totalorder %s5676_s12, %s5676_s12 }
  0x3c   : > { %p5415_p13 = scmp.ne.s32.totalorder %s5676_s12, %s5414_s9  ;;  %p5423_p9 = scmp.lt.s32.totalorder %s5414_s9, %s5414_s9 }
  0x3e   : > { %p5417_p0 = pnand %p5415_p13, %p5686_p3  ;;  %p5424_p10 = por %p5423_p9, %p5422_p8 }
  0x40   : > { %p5418_p7 = pneg %p5417_p0 }
  0x42   : > { %p5425_p1 = pnand %p5424_p10, %p5418_p7 }
  0x44   : > { %5428 = shalt.err (!%p5425_p1)
}
  0x45   : > { %4931 = dma.hbm_to_vmem [thread:$0]  (!%p5672_p2), %s5955_s2, 128, %s5676_s12, [#allocation6]  }
  0x46   : > { %s5565_s11 = smov [#allocation8]   ;;  %s5429_s16 = scalar_lea.hbm %s5956_s3, 32768 }
  0x47   : > { %s200_s13 = sshll.u32 %s5565_s11, 4  ;;  %p5430_p4 = scmp.ne.s32.totalorder %s5956_s3, %s5429_s16  ;;  %s201_s13 = int_to_ptr.vmem [resolvable:$true] %s200_s13 }
  0x48   : > { %p5436_p11 = scmp.lt.u32.totalorder %s5429_s16, %s5956_s3 }
  0x49   : > { %p5432_p6 = pnand %p5430_p4, %p5686_p3 }
  0x4b   : > { %p5433_p5 = pneg %p5432_p6 }
  0x4d   : > { %p5438_p12 = pnand %p5436_p11, %p5433_p5 }
  0x4f   : > { %5441 = shalt.err (!%p5438_p12)
}
  0x50   : > { %s5442_s12 = scalar_lea.vmem %s201_s13, 32768  ;;  %p5450_p8 = scmp.lt.s32.totalorder %s201_s13, %s201_s13 }
  0x51   : > { %p5443_p13 = scmp.ne.s32.totalorder %s201_s13, %s5442_s12  ;;  %p5451_p9 = scmp.lt.s32.totalorder %s5442_s12, %s5442_s12 }
  0x53   : > { %p5445_p0 = pnand %p5443_p13, %p5686_p3  ;;  %p5452_p10 = por %p5451_p9, %p5450_p8 }
  0x55   : > { %p5446_p7 = pneg %p5445_p0 }
  0x57   : > { %p5453_p1 = pnand %p5452_p10, %p5446_p7 }
  0x59   : > { %5456 = shalt.err (!%p5453_p1)
}
  0x5a   : > { %s5566_s9 = smov 256   ;;  %s5567_s24 = smov 16  }
  0x5b   : > { %4934 = dma.hbm_to_vmem [thread:$0]  (!%p5672_p2), %s5956_s3, 32768, %s201_s13, [#allocation9], %s5566_s9, %s5566_s9, %s5567_s24  }
  0x5c   : > { %p4302_p4 = scmp.ge.s32.totalorder %s5559_s21, 3 }
  0x5d   : > { %p5973_p6 = scmp.ne.s32.totalorder (!%p4302_p4), %s5966_s28, 0 }
  0x5e   : > { %213 = sbr.rel (%p4302_p4) target bundleno = 136 (0x88), region = 32 }
  0x65   : > { %216 = sbr.rel (!%p5973_p6) target bundleno = 136 (0x88), region = 36  ;;  %s217_s23 = sand.u32 (%p5973_p6), 1, %s5555_s20  }
  0x66   : > { %s4304_s14 = sshll.u32 (%p5973_p6), %s5559_s21, 1  ;;  %s4303_s15 = sshll.u32 (%p5973_p6), %s217_s23, 6 }
  0x67   : > { %s223_s16 = ssub.s32 (%p5973_p6), 5, %s4304_s14  ;;  %s5751_s25 = scalar_lea.sflag (%p5973_p6), [#allocation3], %s217_s23 }
  0x68   : > { %p224_p3 = scmp.lt.s32.totalorder (%p5973_p6), %s223_s16, 2  ;;  %s221_s13 = scalar_lea.vmem (%p5973_p6), [#allocation2], %s4303_s15 }
  0x6c   : > { %s5988_s16 = smov (!%p224_p3, %s223_s16), 2 }
  0x6d   : > { %s5748_s17 = sshll.u32 %s5988_s16, 9 }
  0x6e   : > { %s229_s10 = ssub.s32 1024, %s5748_s17 }
  0x6f   : > { %230 = vsyncadd %s5751_s25, %s229_s10  ;;  %p4307_p2 = scmp.ne.s32.totalorder %s5748_s17, 0  ;;  %s4843_s28 = sshll.u32 %s5559_s21, 10 }
  0x70   : > { %s5759_s12 = scalar_lea.hbm %s5953_s0, %s4843_s28  ;;  %s236_s9 = sshll.u32 %s221_s13, 4  ;;  %s5761_s9 = int_to_ptr.vmem [resolvable:$true] %s236_s9 }
  0x71   : > { %s5457_s24 = scalar_lea.hbm %s5759_s12, %s5748_s17  ;;  %s5461_s23 = scalar_lea.hbm %s5953_s0, 2560 }
  0x72   : > { %p5458_p5 = scmp.ne.s32.totalorder %s5759_s12, %s5457_s24  ;;  %p5462_p13 = scmp.lt.u32.totalorder %s5759_s12, %s5953_s0 }
  0x73   : > { %p5463_p0 = scmp.lt.u32.totalorder %s5461_s23, %s5457_s24  ;;  %p5465_p8 = scmp.lt.u32.totalorder %s5457_s24, %s5759_s12 }
  0x74   : > { %p5459_p11 = pnand %p5458_p5, %p4307_p2 }
  0x75   : > { %p5464_p7 = por %p5463_p0, %p5462_p13 }
  0x76   : > { %p5460_p12 = pneg %p5459_p11 }
  0x77   : > { %p5466_p9 = por %p5465_p8, %p5464_p7 }
  0x79   : > { %p5467_p10 = pnand %p5466_p9, %p5460_p12 }
  0x7b   : > { %5470 = shalt.err (!%p5467_p10)
}
  0x7c   : > { %s5471_s16 = scalar_lea.vmem %s5761_s9, %s5748_s17  ;;  %s5568_s10 = smov [#allocation2]  }
  0x7d   : > { %p5472_p1 = scmp.ne.s32.totalorder %s5761_s9, %s5471_s16  ;;  %s5475_s13 = sshll.u32 %s5568_s10, 4  ;;  %s5476_s13 = int_to_ptr.vmem [resolvable:$false] %s5475_s13 }
  0x7e   : > { %s5477_s28 = scalar_lea.vmem %s5476_s13, 2048  ;;  %p5478_p3 = scmp.lt.s32.totalorder %s5761_s9, %s5476_s13 }
  0x7f   : > { %p5473_p4 = pnand %p5472_p1, %p4307_p2  ;;  %p5479_p5 = scmp.lt.s32.totalorder %s5477_s28, %s5471_s16 }
  0x81   : > { %p5474_p6 = pneg %p5473_p4  ;;  %p5480_p11 = por %p5479_p5, %p5478_p3 }
  0x83   : > { %p5481_p13 = pnand %p5480_p11, %p5474_p6 }
  0x85   : > { %5484 = shalt.err (!%p5481_p13)
}
  0x86   : > { %s5569_s26 = smov 512   ;;  %s5570_s8 = smov 32  }
  0x87   : > { %242 = dma.hbm_to_vmem [thread:$0]  (%p4307_p2), %s5759_s12, %s5748_s17, %s5761_s9, %s5751_s25, %s5569_s26, %s5569_s26, %s5570_s8  }
  0x88 PF: > { %p5974_p12 = scmp.ne.s32.totalorder %s5970_s7, 0 }
  0x89   : > { %s5791_s24 = sand.u32 (!%p5974_p12), 1, %s5551_s19   ;;  %p5975_p0 = scmp.ne.s32.totalorder (!%p5974_p12), %s5967_s29, 0 }
  0x8a   : > { %248 = sbr.rel (%p5974_p12) target bundleno = 944 (0x3b0), region = 40  ;;  %s4313_s27 = sshll.u32 (!%p5974_p12), %s5791_s24, 6 }
  0x8b   : > { %s251_s11 = scalar_lea.sflag (!%p5974_p12), [#allocation3], %s5791_s24  ;;  %s5797_s23 = scalar_lea.vmem (!%p5974_p12), [#allocation2], %s4313_s27 }
  0x91   : > { %5530 = dma.done.wait (%p5975_p0), %s251_s11, 1024  }
  0x92   : > { %5532 = vsyncadd (%p5975_p0), %s251_s11, 4294966272  ;;  %p5976_p2 = scmp.eq.s32.totalorder %s5625_s22, 0 }
  0x94   : > { %5534 = dma.done.wait (%p5976_p2), [#allocation6], 32896   ;;  %p5977_p7 = pmov %p5976_p2 }
  0x95   : > { %p5978_p8 = pmov %p5976_p2 }
  0x96   : > { %5536 = vsyncadd (%p5977_p7), [#allocation6], 4294934400 }
  0x97   : > { %5538 = dma.done.wait (%p5978_p8), [#allocation9], 32768   ;;  %p5979_p9 = pmov %p5976_p2 }
  0x98   : > { %v317_v0 = vld [vmem:[#allocation5] sm:$0xff]  ;;  %v318_v2 = vld [vmem:[#allocation5 + $0x8] sm:$0xff]  ;;  %s292_s17 = scalar_lea.vmem [#allocation10], %s4313_s27  ;;  %s4174_s25 = scalar_lea.sflag [#allocation4], %s5791_s24 }
  0x99   : > { %5540 = vsyncadd (%p5979_p9), [#allocation9], 4294934528  ;;  %v321_v1 = vld [vmem:[#allocation5 + $0x20] sm:$0xff]  ;;  %v322_v4 = vld [vmem:[#allocation5 + $0x28] sm:$0xff]  ;;  %p5980_p10 = scmp.ne.s32.totalorder %s5968_s30, 0 }
  0x9a   : > { %v4319_v3 = vcombine.high %v317_v0, %v321_v1  ;;  %v4318_v5 = vcombine.low %v317_v0, %v321_v1  ;;  %v325_v6 = vld [vmem:[#allocation5 + $0x40] sm:$0xff]  ;;  %v4321_v8 = vcombine.high %v318_v2, %v322_v4  ;;  %v4320_v9 = vcombine.low %v318_v2, %v322_v4  ;;  %v326_v11 = vld [vmem:[#allocation5 + $0x48] sm:$0xff]  ;;  %s4831_s12 = sshll.u32 (%p5980_p10), %s5625_s22, 1 }
  0x9b   : > { %v329_v7 = vld [vmem:[#allocation5 + $0x60] sm:$0xff]  ;;  %v330_v12 = vld [vmem:[#allocation5 + $0x68] sm:$0xff]  ;;  %s4182_s9 = ssub.s32 (%p5980_p10), 5, %s4831_s12 }
  0x9c   : > { %v4327_v10 = vcombine.high %v325_v6, %v329_v7  ;;  %v333_v13 = vld [vmem:[#allocation5 + $0x80] sm:$0xff]  ;;  %1895 = vmatprep.subr.bf16.mxu0 %v4319_v3  ;;  %v4329_v14 = vcombine.high %v326_v11, %v330_v12  ;;  %v334_v16 = vld [vmem:[#allocation5 + $0x88] sm:$0xff]  ;;  %1981 = vmatprep.subr.bf16.mxu1 %v4321_v8  ;;  %v4326_v18 = vcombine.low %v325_v6, %v329_v7  ;;  %p4183_p1 = scmp.lt.s32.totalorder (%p5980_p10), %s4182_s9, 2 }
  0x9d   : > { %v337_v15 = vld [vmem:[#allocation5 + $0xa0] sm:$0xff]  ;;  %v338_v17 = vld [vmem:[#allocation5 + $0xa8] sm:$0xff]  ;;  %1896 = vmatpush1.bf16.msra.mxu0 %v4318_v5  ;;  %1982 = vmatpush1.bf16.msra.mxu1 %v4320_v9  ;;  %v4328_v19 = vcombine.low %v326_v11, %v330_v12 }
  0x9e   : > { %1897 = vmatprep.subr.bf16.mxu0 %v4327_v10  ;;  %v4335_v20 = vcombine.high %v333_v13, %v337_v15  ;;  %1983 = vmatprep.subr.bf16.mxu1 %v4329_v14  ;;  %v4337_v21 = vcombine.high %v334_v16, %v338_v17  ;;  %v341_v22 = vld [vmem:[#allocation5 + $0xc0] sm:$0xff]  ;;  %v342_v24 = vld [vmem:[#allocation5 + $0xc8] sm:$0xff]  ;;  %v4334_v26 = vcombine.low %v333_v13, %v337_v15 }
  0x9f   : > { %v345_v23 = vld [vmem:[#allocation5 + $0xe0] sm:$0xff]  ;;  %v346_v25 = vld [vmem:[#allocation5 + $0xe8] sm:$0xff]  ;;  %v4336_v27 = vcombine.low %v334_v16, %v338_v17 }
  0xa0   : > { %v4343_v28 = vcombine.high %v341_v22, %v345_v23  ;;  %v4345_v29 = vcombine.high %v342_v24, %v346_v25  ;;  %v349_v30 = vld [vmem:[#allocation5 + $0x100] sm:$0xff]  ;;  %v350_v32 = vld [vmem:[#allocation5 + $0x108] sm:$0xff]  ;;  %v4342_v34 = vcombine.low %v341_v22, %v345_v23  ;;  %v4344_v35 = vcombine.low %v342_v24, %v346_v25 }
  0xa1   : > { %1898 = vmatpush1.bf16.msra.mxu0 %v4326_v18  ;;  %1984 = vmatpush1.bf16.msra.mxu1 %v4328_v19  ;;  %v353_v31 = vld [vmem:[#allocation5 + $0x120] sm:$0xff]  ;;  %v354_v33 = vld [vmem:[#allocation5 + $0x128] sm:$0xff] }
  0xa2   : > { %1899 = vmatprep.subr.bf16.mxu0 %v4335_v20  ;;  %1985 = vmatprep.subr.bf16.mxu1 %v4337_v21  ;;  %v4351_v36 = vcombine.high %v349_v30, %v353_v31  ;;  %v4353_v37 = vcombine.high %v350_v32, %v354_v33  ;;  %v357_v38 = vld [vmem:[#allocation5 + $0x140] sm:$0xff]  ;;  %v358_v40 = vld [vmem:[#allocation5 + $0x148] sm:$0xff]  ;;  %v4350_v42 = vcombine.low %v349_v30, %v353_v31 }
  0xa3   : > { %v361_v39 = vld [vmem:[#allocation5 + $0x160] sm:$0xff]  ;;  %v362_v41 = vld [vmem:[#allocation5 + $0x168] sm:$0xff]  ;;  %v4352_v43 = vcombine.low %v350_v32, %v354_v33 }
  0xa4   : > { %v4359_v44 = vcombine.high %v357_v38, %v361_v39  ;;  %v4361_v45 = vcombine.high %v358_v40, %v362_v41  ;;  %v365_v46 = vld [vmem:[#allocation5 + $0x180] sm:$0xff]  ;;  %v366_v48 = vld [vmem:[#allocation5 + $0x188] sm:$0xff]  ;;  %v4358_v50 = vcombine.low %v357_v38, %v361_v39  ;;  %v4360_v51 = vcombine.low %v358_v40, %v362_v41 }
  0xa5   : > { %1900 = vmatpush1.bf16.msra.mxu0 %v4334_v26  ;;  %1986 = vmatpush1.bf16.msra.mxu1 %v4336_v27  ;;  %v369_v47 = vld [vmem:[#allocation5 + $0x1a0] sm:$0xff]  ;;  %v370_v49 = vld [vmem:[#allocation5 + $0x1a8] sm:$0xff] }
  0xa6   : > { %1901 = vmatprep.subr.bf16.mxu0 %v4343_v28  ;;  %1987 = vmatprep.subr.bf16.mxu1 %v4345_v29  ;;  %v4367_v52 = vcombine.high %v365_v46, %v369_v47  ;;  %v306_v53 = vld [vmem:[%s5797_s23 + $0x8] sm:$0xff]  ;;  %v4369_v55 = vcombine.high %v366_v48, %v370_v49  ;;  %v373_v56 = vld [vmem:[#allocation5 + $0x1c0] sm:$0xff]  ;;  %v4366_v61 = vcombine.low %v365_v46, %v369_v47 }
  0xa7   : > { %v310_v54 = vld [vmem:[%s5797_s23 + $0x28] sm:$0xff]  ;;  %v377_v57 = vld [vmem:[#allocation5 + $0x1e0] sm:$0xff]  ;;  %v4368_v62 = vcombine.low %v366_v48, %v370_v49 }
  0xa8   : > { %v5813_v58 = vpack.c.bf16 %v310_v54, %v306_v53  ;;  %v374_v59 = vld [vmem:[#allocation5 + $0x1c8] sm:$0xff]  ;;  %v4375_v63 = vcombine.high %v373_v56, %v377_v57  ;;  %v381_v1 = vld [vmem:[#allocation5 + $0x200] sm:$0xff]  ;;  %v4374_v5 = vcombine.low %v373_v56, %v377_v57 }
  0xa9   : > { %1902 = vmatpush1.bf16.msra.mxu0 %v4342_v34  ;;  %1988 = vmatpush1.bf16.msra.mxu1 %v4344_v35  ;;  %v378_v60 = vld [vmem:[#allocation5 + $0x1e8] sm:$0xff]  ;;  %v385_v2 = vld [vmem:[#allocation5 + $0x220] sm:$0xff] }
  0xaa   : > { %1903 = vmatprep.subr.bf16.mxu0 %v4351_v36  ;;  %1989 = vmatprep.subr.bf16.mxu1 %v4353_v37  ;;  %v4377_v0 = vcombine.high %v374_v59, %v378_v60  ;;  %v382_v3 = vld [vmem:[#allocation5 + $0x208] sm:$0xff]  ;;  %v4376_v6 = vcombine.low %v374_v59, %v378_v60  ;;  %v4383_v7 = vcombine.high %v381_v1, %v385_v2  ;;  %v389_v9 = vld [vmem:[#allocation5 + $0x240] sm:$0xff] }
  0xab   : > { %1927 = vmatprep.mubr.bf16.mxu0 %v5813_v58  ;;  %2013 = vmatprep.mubr.bf16.mxu1 %v5813_v58  ;;  %v386_v4 = vld [vmem:[#allocation5 + $0x228] sm:$0xff]  ;;  %v393_v10 = vld [vmem:[#allocation5 + $0x260] sm:$0xff]  ;;  %v4382_v13 = vcombine.low %v381_v1, %v385_v2 }
  0xac   : > { %v4385_v8 = vcombine.high %v382_v3, %v386_v4  ;;  %v390_v11 = vld [vmem:[#allocation5 + $0x248] sm:$0xff]  ;;  %v4384_v14 = vcombine.low %v382_v3, %v386_v4  ;;  %v4391_v15 = vcombine.high %v389_v9, %v393_v10  ;;  %v397_v17 = vld [vmem:[#allocation5 + $0x280] sm:$0xff]  ;;  %v4390_v21 = vcombine.low %v389_v9, %v393_v10 }
  0xad   : > { %1904 = vmatpush1.bf16.msra.mxu0 %v4350_v42  ;;  %1990 = vmatpush1.bf16.msra.mxu1 %v4352_v43  ;;  %v394_v12 = vld [vmem:[#allocation5 + $0x268] sm:$0xff]  ;;  %v401_v18 = vld [vmem:[#allocation5 + $0x2a0] sm:$0xff] }
  0xae   : > { %1905 = vmatprep.subr.bf16.mxu0 %v4359_v44  ;;  %1991 = vmatprep.subr.bf16.mxu1 %v4361_v45  ;;  %v4393_v16 = vcombine.high %v390_v11, %v394_v12  ;;  %v398_v19 = vld [vmem:[#allocation5 + $0x288] sm:$0xff]  ;;  %v4392_v22 = vcombine.low %v390_v11, %v394_v12  ;;  %v4399_v23 = vcombine.high %v397_v17, %v401_v18  ;;  %v405_v25 = vld [vmem:[#allocation5 + $0x2c0] sm:$0xff] }
  0xaf   : > { %v402_v20 = vld [vmem:[#allocation5 + $0x2a8] sm:$0xff]  ;;  %v409_v26 = vld [vmem:[#allocation5 + $0x2e0] sm:$0xff]  ;;  %v4398_v29 = vcombine.low %v397_v17, %v401_v18  ;;  %v308_v17 = vld [vmem:[%s5797_s23 + $0x18] sm:$0xff] }
  0xb0   : > { %v4401_v24 = vcombine.high %v398_v19, %v402_v20  ;;  %v406_v27 = vld [vmem:[#allocation5 + $0x2c8] sm:$0xff]  ;;  %v4400_v30 = vcombine.low %v398_v19, %v402_v20  ;;  %v4407_v31 = vcombine.high %v405_v25, %v409_v26  ;;  %v413_v33 = vld [vmem:[#allocation5 + $0x300] sm:$0xff]  ;;  %v4406_v37 = vcombine.low %v405_v25, %v409_v26  ;;  %v312_v18 = vld [vmem:[%s5797_s23 + $0x38] sm:$0xff] }
  0xb1   : > { %1906 = vmatpush1.bf16.msra.mxu0 %v4358_v50  ;;  %1992 = vmatpush1.bf16.msra.mxu1 %v4360_v51  ;;  %v410_v28 = vld [vmem:[#allocation5 + $0x2e8] sm:$0xff]  ;;  %v417_v34 = vld [vmem:[#allocation5 + $0x320] sm:$0xff]  ;;  %v5823_v25 = vpack.c.bf16 %v312_v18, %v308_v17 }
  0xb2   : > { %1907 = vmatprep.subr.bf16.mxu0 %v4367_v52  ;;  %1993 = vmatprep.subr.bf16.mxu1 %v4369_v55  ;;  %v4409_v32 = vcombine.high %v406_v27, %v410_v28  ;;  %v414_v35 = vld [vmem:[#allocation5 + $0x308] sm:$0xff]  ;;  %v4408_v38 = vcombine.low %v406_v27, %v410_v28  ;;  %v4415_v39 = vcombine.high %v413_v33, %v417_v34  ;;  %v421_v41 = vld [vmem:[#allocation5 + $0x340] sm:$0xff] }
  0xb3   : > { %v418_v36 = vld [vmem:[#allocation5 + $0x328] sm:$0xff]  ;;  %v425_v42 = vld [vmem:[#allocation5 + $0x360] sm:$0xff]  ;;  %v4414_v45 = vcombine.low %v413_v33, %v417_v34 }
  0xb4   : > { %v4417_v40 = vcombine.high %v414_v35, %v418_v36  ;;  %v422_v43 = vld [vmem:[#allocation5 + $0x348] sm:$0xff]  ;;  %v4416_v46 = vcombine.low %v414_v35, %v418_v36  ;;  %v4423_v47 = vcombine.high %v421_v41, %v425_v42  ;;  %v429_v49 = vld [vmem:[#allocation5 + $0x380] sm:$0xff]  ;;  %v4422_v53 = vcombine.low %v421_v41, %v425_v42 }
  0xb5   : > { %1908 = vmatpush1.bf16.msra.mxu0 %v4366_v61  ;;  %1994 = vmatpush1.bf16.msra.mxu1 %v4368_v62  ;;  %v426_v44 = vld [vmem:[#allocation5 + $0x368] sm:$0xff]  ;;  %v433_v50 = vld [vmem:[#allocation5 + $0x3a0] sm:$0xff] }
  0xb6   : > { %1909 = vmatprep.subr.bf16.mxu0 %v4375_v63  ;;  %1995 = vmatprep.subr.bf16.mxu1 %v4377_v0  ;;  %v4425_v48 = vcombine.high %v422_v43, %v426_v44  ;;  %v430_v51 = vld [vmem:[#allocation5 + $0x388] sm:$0xff]  ;;  %v4424_v54 = vcombine.low %v422_v43, %v426_v44  ;;  %v4431_v55 = vcombine.high %v429_v49, %v433_v50  ;;  %v437_v57 = vld [vmem:[#allocation5 + $0x3c0] sm:$0xff] }
  0xb7   : > { %v434_v52 = vld [vmem:[#allocation5 + $0x3a8] sm:$0xff]  ;;  %v441_v59 = vld [vmem:[#allocation5 + $0x3e0] sm:$0xff]  ;;  %v4430_v62 = vcombine.low %v429_v49, %v433_v50 }
  0xb8   : > { %v4433_v56 = vcombine.high %v430_v51, %v434_v52  ;;  %v438_v60 = vld [vmem:[#allocation5 + $0x3c8] sm:$0xff]  ;;  %v4432_v63 = vcombine.low %v430_v51, %v434_v52  ;;  %v4439_v0 = vcombine.high %v437_v57, %v441_v59  ;;  %v445_v2 = vld [vmem:[#allocation5 + $0x400] sm:$0xff] }
  0xb9   : > { %1910 = vmatpush1.bf16.msra.mxu0 %v4374_v5  ;;  %1996 = vmatpush1.bf16.msra.mxu1 %v4376_v6  ;;  %v442_v61 = vld [vmem:[#allocation5 + $0x3e8] sm:$0xff]  ;;  %v449_v3 = vld [vmem:[#allocation5 + $0x420] sm:$0xff]  ;;  %v4438_v6 = vcombine.low %v437_v57, %v441_v59 }
  0xba   : > { %1911 = vmatprep.subr.bf16.mxu0 %v4383_v7  ;;  %1997 = vmatprep.subr.bf16.mxu1 %v4385_v8  ;;  %v4441_v1 = vcombine.high %v438_v60, %v442_v61  ;;  %v446_v4 = vld [vmem:[#allocation5 + $0x408] sm:$0xff]  ;;  %v305_v7 = vld [vmem:[%s5797_s23] sm:$0xff]  ;;  %v4440_v9 = vcombine.low %v438_v60, %v442_v61  ;;  %v4447_v10 = vcombine.high %v445_v2, %v449_v3 }
  0xbb   : > { %v450_v5 = vld [vmem:[#allocation5 + $0x428] sm:$0xff]  ;;  %v309_v8 = vld [vmem:[%s5797_s23 + $0x20] sm:$0xff]  ;;  %v4446_v19 = vcombine.low %v445_v2, %v449_v3 }
  0xbc   : > { %v4449_v11 = vcombine.high %v446_v4, %v450_v5  ;;  %v453_v12 = vld [vmem:[#allocation5 + $0x440] sm:$0xff]  ;;  %v4448_v20 = vcombine.low %v446_v4, %v450_v5  ;;  %v462_v26 = vld [vmem:[#allocation5 + $0x488] sm:$0xff] }
  0xbd   : > { %1912 = vmatpush1.bf16.msra.mxu0 %v4382_v13  ;;  %1998 = vmatpush1.bf16.msra.mxu1 %v4384_v14  ;;  %v457_v13 = vld [vmem:[#allocation5 + $0x460] sm:$0xff]  ;;  %v454_v14 = vld [vmem:[#allocation5 + $0x448] sm:$0xff] }
  0xbe   : > { %1913 = vmatprep.subr.bf16.mxu0 %v4391_v15  ;;  %1999 = vmatprep.subr.bf16.mxu1 %v4393_v16  ;;  %v5819_v15 = vpack.c.bf16 %v309_v8, %v305_v7  ;;  %v458_v16 = vld [vmem:[#allocation5 + $0x468] sm:$0xff]  ;;  %v4454_v28 = vcombine.low %v453_v12, %v457_v13  ;;  %v509_v8 = vld [vmem:[#allocation5 + $0x600] sm:$0xff] }
  0xbf   : > { %v466_v27 = vld [vmem:[#allocation5 + $0x4a8] sm:$0xff]  ;;  %v517_v17 = vld [vmem:[#allocation5 + $0x640] sm:$0xff] }
  0xc0   : > { %v470_v33 = vld [vmem:[#allocation5 + $0x4c8] sm:$0xff]  ;;  %v4465_v34 = vcombine.high %v462_v26, %v466_v27  ;;  %v521_v18 = vld [vmem:[#allocation5 + $0x660] sm:$0xff] }
  0xc1   : > { %1914 = vmatpush1.bf16.msra.mxu0 %v4390_v21  ;;  %2000 = vmatpush1.bf16.msra.mxu1 %v4392_v22  ;;  %v4455_v21 = vcombine.high %v453_v12, %v457_v13  ;;  %v4457_v22 = vcombine.high %v454_v14, %v458_v16  ;;  %v474_v35 = vld [vmem:[#allocation5 + $0x4e8] sm:$0xff] }
  0xc2   : > { %1915 = vmatprep.subr.bf16.mxu0 %v4399_v23  ;;  %2001 = vmatprep.subr.bf16.mxu1 %v4401_v24  ;;  %v461_v23 = vld [vmem:[#allocation5 + $0x480] sm:$0xff]  ;;  %v478_v41 = vld [vmem:[#allocation5 + $0x508] sm:$0xff]  ;;  %v4473_v42 = vcombine.high %v470_v33, %v474_v35 }
  0xc3   : > { %v465_v24 = vld [vmem:[#allocation5 + $0x4a0] sm:$0xff]  ;;  %v482_v43 = vld [vmem:[#allocation5 + $0x528] sm:$0xff] }
  0xc4   : > { %v4462_v36 = vcombine.low %v461_v23, %v465_v24  ;;  %v486_v49 = vld [vmem:[#allocation5 + $0x548] sm:$0xff]  ;;  %v4481_v50 = vcombine.high %v478_v41, %v482_v43 }
  0xc5   : > { %1916 = vmatpush1.bf16.msra.mxu0 %v4398_v29  ;;  %2002 = vmatpush1.bf16.msra.mxu1 %v4400_v30  ;;  %v4456_v29 = vcombine.low %v454_v14, %v458_v16  ;;  %v4463_v30 = vcombine.high %v461_v23, %v465_v24  ;;  %v490_v51 = vld [vmem:[#allocation5 + $0x568] sm:$0xff]  ;;  %v4519_v24 = vcombine.high %v517_v17, %v521_v18 }
  0xc6   : > { %1917 = vmatprep.subr.bf16.mxu0 %v4407_v31  ;;  %2003 = vmatprep.subr.bf16.mxu1 %v4409_v32  ;;  %v469_v31 = vld [vmem:[#allocation5 + $0x4c0] sm:$0xff]  ;;  %v494_v57 = vld [vmem:[#allocation5 + $0x588] sm:$0xff]  ;;  %v4489_v59 = vcombine.high %v486_v49, %v490_v51 }
  0xc7   : > { %v473_v32 = vld [vmem:[#allocation5 + $0x4e0] sm:$0xff]  ;;  %v498_v60 = vld [vmem:[#allocation5 + $0x5a8] sm:$0xff] }
  0xc8   : > { %v4470_v44 = vcombine.low %v469_v31, %v473_v32  ;;  %v502_v2 = vld [vmem:[#allocation5 + $0x5c8] sm:$0xff]  ;;  %v4497_v3 = vcombine.high %v494_v57, %v498_v60 }
  0xc9   : > { %1918 = vmatpush1.bf16.msra.mxu0 %v4406_v37  ;;  %2004 = vmatpush1.bf16.msra.mxu1 %v4408_v38  ;;  %v4464_v37 = vcombine.low %v462_v26, %v466_v27  ;;  %v4471_v38 = vcombine.high %v469_v31, %v473_v32  ;;  %v506_v4 = vld [vmem:[#allocation5 + $0x5e8] sm:$0xff]  ;;  %v525_v26 = vld [vmem:[#allocation5 + $0x680] sm:$0xff]  ;;  %v4518_v31 = vcombine.low %v517_v17, %v521_v18  ;;  %v311_v17 = vld [vmem:[%s5797_s23 + $0x30] sm:$0xff] }
  0xca   : > { %1919 = vmatprep.subr.bf16.mxu0 %v4415_v39  ;;  %2005 = vmatprep.subr.bf16.mxu1 %v4417_v40  ;;  %v477_v39 = vld [vmem:[#allocation5 + $0x500] sm:$0xff]  ;;  %v514_v12 = vld [vmem:[#allocation5 + $0x628] sm:$0xff]  ;;  %v4504_v14 = vcombine.low %v502_v2, %v506_v4  ;;  %v324_v18 = vld [vmem:[#allocation5 + $0x38] sm:$0xff] }
  0xcb   : > { %v481_v40 = vld [vmem:[#allocation5 + $0x520] sm:$0xff] }
  0xcc   : > { %v4478_v52 = vcombine.low %v477_v39, %v481_v40  ;;  %v529_v27 = vld [vmem:[#allocation5 + $0x6a0] sm:$0xff] }
  0xcd   : > { %1920 = vmatpush1.bf16.msra.mxu0 %v4414_v45  ;;  %2006 = vmatpush1.bf16.msra.mxu1 %v4416_v46  ;;  %v4472_v45 = vcombine.low %v470_v33, %v474_v35  ;;  %v4479_v46 = vcombine.high %v477_v39, %v481_v40  ;;  %v4527_v33 = vcombine.high %v525_v26, %v529_v27  ;;  %v537_v35 = vld [vmem:[#allocation5 + $0x6e0] sm:$0xff] }
  0xce   : > { %1921 = vmatprep.subr.bf16.mxu0 %v4423_v47  ;;  %2007 = vmatprep.subr.bf16.mxu1 %v4425_v48  ;;  %v485_v47 = vld [vmem:[#allocation5 + $0x540] sm:$0xff]  ;;  %v4526_v39 = vcombine.low %v525_v26, %v529_v27  ;;  %v332_v27 = vld [vmem:[#allocation5 + $0x78] sm:$0xff] }
  0xcf   : > { %v489_v48 = vld [vmem:[#allocation5 + $0x560] sm:$0xff] }
  0xd0   : > { %v4486_v61 = vcombine.low %v485_v47, %v489_v48 }
  0xd1   : > { %1922 = vmatpush1.bf16.msra.mxu0 %v4422_v53  ;;  %2008 = vmatpush1.bf16.msra.mxu1 %v4424_v54  ;;  %v4480_v53 = vcombine.low %v478_v41, %v482_v43  ;;  %v4487_v54 = vcombine.high %v485_v47, %v489_v48  ;;  %v545_v43 = vld [vmem:[#allocation5 + $0x720] sm:$0xff] }
  0xd2   : > { %1923 = vmatprep.subr.bf16.mxu0 %v4431_v55  ;;  %2009 = vmatprep.subr.bf16.mxu1 %v4433_v56  ;;  %v493_v55 = vld [vmem:[#allocation5 + $0x580] sm:$0xff] }
  0xd3   : > { %v497_v56 = vld [vmem:[#allocation5 + $0x5a0] sm:$0xff] }
  0xd4   : > { %v4494_v5 = vcombine.low %v493_v55, %v497_v56 }
  0xd5   : > { %1924 = vmatpush1.bf16.msra.mxu0 %v4430_v62  ;;  %2010 = vmatpush1.bf16.msra.mxu1 %v4432_v63  ;;  %v4488_v62 = vcombine.low %v486_v49, %v490_v51  ;;  %v4495_v63 = vcombine.high %v493_v55, %v497_v56  ;;  %v553_v51 = vld [vmem:[#allocation5 + $0x760] sm:$0xff] }
  0xd6   : > { %1925 = vmatprep.subr.bf16.mxu0 %v4439_v0  ;;  %2011 = vmatprep.subr.bf16.mxu1 %v4441_v1  ;;  %v501_v0 = vld [vmem:[#allocation5 + $0x5c0] sm:$0xff] }
  0xd7   : > { %v505_v1 = vld [vmem:[#allocation5 + $0x5e0] sm:$0xff] }
  0xd8   : > { %v4503_v7 = vcombine.high %v501_v0, %v505_v1  ;;  %v4502_v13 = vcombine.low %v501_v0, %v505_v1 }
  0xd9   : > { %1926 = vmatpush1.bf16.msra.mxu0 %v4438_v6  ;;  %2012 = vmatpush1.bf16.msra.mxu1 %v4440_v9  ;;  %v4496_v6 = vcombine.low %v494_v57, %v498_v60  ;;  %v513_v9 = vld [vmem:[#allocation5 + $0x620] sm:$0xff] }
  0xda   : > { %1938 = vmatprep.subr.bf16.mxu0 %v4447_v10  ;;  %2024 = vmatprep.subr.bf16.mxu1 %v4449_v11  ;;  %v510_v10 = vld [vmem:[#allocation5 + $0x608] sm:$0xff]  ;;  %v4505_v11 = vcombine.high %v502_v2, %v506_v4  ;;  %v4511_v16 = vcombine.high %v509_v8, %v513_v9  ;;  %v561_v60 = vld [vmem:[#allocation5 + $0x7a0] sm:$0xff] }
  0xdb   : > { %v4512_v23 = vcombine.low %v510_v10, %v514_v12  ;;  %v569_v4 = vld [vmem:[#allocation5 + $0x7e0] sm:$0xff] }
  0xdc   : > { %1928 = vmatmul.mubr.bf16.vlgmr.msra.gmra.mrb[0].mxu0 %v5819_v15  ;;  %2014 = vmatmul.mubr.bf16.vlgmr.msra.gmra.mrb[0].mxu1 %v5819_v15 }
  0xdd   : > { %1939 = vmatpush1.bf16.msra.mxu0 %v4446_v19  ;;  %2025 = vmatpush1.bf16.msra.mxu1 %v4448_v20  ;;  %v518_v19 = vld [vmem:[#allocation5 + $0x648] sm:$0xff]  ;;  %v4513_v20 = vcombine.high %v510_v10, %v514_v12  ;;  %v323_v12 = vld [vmem:[#allocation5 + $0x30] sm:$0xff] }
  0xde   : > { %1940 = vmatprep.subr.bf16.mxu0 %v4455_v21  ;;  %2026 = vmatprep.subr.bf16.mxu1 %v4457_v22  ;;  %v522_v21 = vld [vmem:[#allocation5 + $0x668] sm:$0xff]  ;;  %v4510_v22 = vcombine.low %v509_v8, %v513_v9 }
  0xdf   : > { %1970 = vmatprep.mubr.bf16.mxu0 %v5823_v25  ;;  %2056 = vmatprep.mubr.bf16.mxu1 %v5823_v25  ;;  %v4520_v32 = vcombine.low %v518_v19, %v522_v21 }
  0xe1   : > { %1941 = vmatpush1.bf16.msra.mxu0 %v4454_v28  ;;  %2027 = vmatpush1.bf16.msra.mxu1 %v4456_v29  ;;  %v526_v28 = vld [vmem:[#allocation5 + $0x688] sm:$0xff]  ;;  %v4521_v29 = vcombine.high %v518_v19, %v522_v21 }
  0xe2   : > { %1942 = vmatprep.subr.bf16.mxu0 %v4463_v30  ;;  %2028 = vmatprep.subr.bf16.mxu1 %v4465_v34  ;;  %v530_v30 = vld [vmem:[#allocation5 + $0x6a8] sm:$0xff]  ;;  %v533_v34 = vld [vmem:[#allocation5 + $0x6c0] sm:$0xff] }
  0xe3   : > { %v4528_v40 = vcombine.low %v526_v28, %v530_v30  ;;  %v4535_v41 = vcombine.high %v533_v34, %v537_v35  ;;  %v4534_v47 = vcombine.low %v533_v34, %v537_v35  ;;  %v336_v34 = vld [vmem:[#allocation5 + $0x98] sm:$0xff] }
  0xe4   : > { %v340_v35 = vld [vmem:[#allocation5 + $0xb8] sm:$0xff] }
  0xe5   : > { %1943 = vmatpush1.bf16.msra.mxu0 %v4462_v36  ;;  %2029 = vmatpush1.bf16.msra.mxu1 %v4464_v37  ;;  %v534_v36 = vld [vmem:[#allocation5 + $0x6c8] sm:$0xff]  ;;  %v4529_v37 = vcombine.high %v526_v28, %v530_v30  ;;  %v335_v30 = vld [vmem:[#allocation5 + $0x90] sm:$0xff] }
  0xe6   : > { %1944 = vmatprep.subr.bf16.mxu0 %v4471_v38  ;;  %2030 = vmatprep.subr.bf16.mxu1 %v4473_v42  ;;  %v538_v38 = vld [vmem:[#allocation5 + $0x6e8] sm:$0xff]  ;;  %v541_v42 = vld [vmem:[#allocation5 + $0x700] sm:$0xff] }
  0xe7   : > { %v4536_v48 = vcombine.low %v534_v36, %v538_v38  ;;  %v4543_v49 = vcombine.high %v541_v42, %v545_v43  ;;  %v4542_v55 = vcombine.low %v541_v42, %v545_v43  ;;  %v4341_v42 = vcombine.high %v336_v34, %v340_v35  ;;  %v344_v43 = vld [vmem:[#allocation5 + $0xd8] sm:$0xff] }
  0xe9   : > { %1945 = vmatpush1.bf16.msra.mxu0 %v4470_v44  ;;  %2031 = vmatpush1.bf16.msra.mxu1 %v4472_v45  ;;  %v542_v44 = vld [vmem:[#allocation5 + $0x708] sm:$0xff]  ;;  %v4537_v45 = vcombine.high %v534_v36, %v538_v38 }
  0xea   : > { %1946 = vmatprep.subr.bf16.mxu0 %v4479_v46  ;;  %2032 = vmatprep.subr.bf16.mxu1 %v4481_v50  ;;  %v546_v46 = vld [vmem:[#allocation5 + $0x728] sm:$0xff]  ;;  %v549_v50 = vld [vmem:[#allocation5 + $0x740] sm:$0xff] }
  0xeb   : > { %v4544_v56 = vcombine.low %v542_v44, %v546_v46  ;;  %v4551_v57 = vcombine.high %v549_v50, %v553_v51  ;;  %v4550_v0 = vcombine.low %v549_v50, %v553_v51  ;;  %v352_v50 = vld [vmem:[#allocation5 + $0x118] sm:$0xff] }
  0xed   : > { %1947 = vmatpush1.bf16.msra.mxu0 %v4478_v52  ;;  %2033 = vmatpush1.bf16.msra.mxu1 %v4480_v53  ;;  %v550_v52 = vld [vmem:[#allocation5 + $0x748] sm:$0xff]  ;;  %v4545_v53 = vcombine.high %v542_v44, %v546_v46  ;;  %v348_v44 = vld [vmem:[#allocation5 + $0xf8] sm:$0xff]  ;;  %v4340_v46 = vcombine.low %v336_v34, %v340_v35  ;;  %v399_v35 = vld [vmem:[#allocation5 + $0x290] sm:$0xff] }
  0xee   : > { %1948 = vmatprep.subr.bf16.mxu0 %v4487_v54  ;;  %2034 = vmatprep.subr.bf16.mxu1 %v4489_v59  ;;  %v554_v54 = vld [vmem:[#allocation5 + $0x768] sm:$0xff]  ;;  %v557_v59 = vld [vmem:[#allocation5 + $0x780] sm:$0xff]  ;;  %v4349_v51 = vcombine.high %v344_v43, %v348_v44 }
  0xef   : > { %v4552_v1 = vcombine.low %v550_v52, %v554_v54  ;;  %v4559_v2 = vcombine.high %v557_v59, %v561_v60  ;;  %v4558_v8 = vcombine.low %v557_v59, %v561_v60  ;;  %v364_v60 = vld [vmem:[#allocation5 + $0x178] sm:$0xff] }
  0xf1   : > { %1949 = vmatpush1.bf16.msra.mxu0 %v4486_v61  ;;  %2035 = vmatpush1.bf16.msra.mxu1 %v4488_v62  ;;  %v558_v61 = vld [vmem:[#allocation5 + $0x788] sm:$0xff]  ;;  %v4553_v62 = vcombine.high %v550_v52, %v554_v54  ;;  %v356_v52 = vld [vmem:[#allocation5 + $0x138] sm:$0xff]  ;;  %v4348_v54 = vcombine.low %v344_v43, %v348_v44  ;;  %v407_v43 = vld [vmem:[#allocation5 + $0x2d0] sm:$0xff] }
  0xf2   : > { %1950 = vmatprep.subr.bf16.mxu0 %v4495_v63  ;;  %2036 = vmatprep.subr.bf16.mxu1 %v4497_v3  ;;  %v562_v63 = vld [vmem:[#allocation5 + $0x7a8] sm:$0xff]  ;;  %v565_v3 = vld [vmem:[#allocation5 + $0x7c0] sm:$0xff]  ;;  %v4357_v59 = vcombine.high %v352_v50, %v356_v52  ;;  %v411_v44 = vld [vmem:[#allocation5 + $0x2f0] sm:$0xff] }
  0xf3   : > { %v4560_v9 = vcombine.low %v558_v61, %v562_v63  ;;  %v4567_v10 = vcombine.high %v565_v3, %v569_v4  ;;  %v4566_v19 = vcombine.low %v565_v3, %v569_v4  ;;  %v372_v4 = vld [vmem:[#allocation5 + $0x1b8] sm:$0xff] }
  0xf5   : > { %1951 = vmatpush1.bf16.msra.mxu0 %v4494_v5  ;;  %2037 = vmatpush1.bf16.msra.mxu1 %v4496_v6  ;;  %v566_v5 = vld [vmem:[#allocation5 + $0x7c8] sm:$0xff]  ;;  %v4561_v6 = vcombine.high %v558_v61, %v562_v63 }
  0xf6   : > { %1952 = vmatprep.subr.bf16.mxu0 %v4503_v7  ;;  %2038 = vmatprep.subr.bf16.mxu1 %v4505_v11  ;;  %v570_v7 = vld [vmem:[#allocation5 + $0x7e8] sm:$0xff]  ;;  %v319_v11 = vld [vmem:[#allocation5 + $0x10] sm:$0xff] }
  0xf7   : > { %v4323_v21 = vcombine.high %v319_v11, %v323_v12 }
  0xf9   : > { %1953 = vmatpush1.bf16.msra.mxu0 %v4502_v13  ;;  %2039 = vmatpush1.bf16.msra.mxu1 %v4504_v14  ;;  %v320_v13 = vld [vmem:[#allocation5 + $0x18] sm:$0xff]  ;;  %v4569_v14 = vcombine.high %v566_v5, %v570_v7 }
  0xfa   : > { %1954 = vmatprep.subr.bf16.mxu0 %v4511_v16  ;;  %2040 = vmatprep.subr.bf16.mxu1 %v4513_v20  ;;  %v307_v16 = vld [vmem:[%s5797_s23 + $0x10] sm:$0xff]  ;;  %v4568_v20 = vcombine.low %v566_v5, %v570_v7  ;;  %v4325_v26 = vcombine.high %v320_v13, %v324_v18 }
  0xfb   : > { %v5831_v28 = vpack.c.bf16 %v311_v17, %v307_v16  ;;  %v383_v17 = vld [vmem:[#allocation5 + $0x210] sm:$0xff] }
  0xfd   : > { %1955 = vmatpush1.bf16.msra.mxu0 %v4510_v22  ;;  %2041 = vmatpush1.bf16.msra.mxu1 %v4512_v23  ;;  %v327_v22 = vld [vmem:[#allocation5 + $0x50] sm:$0xff] }
  0xfe   : > { %1956 = vmatprep.subr.bf16.mxu0 %v4519_v24  ;;  %2042 = vmatprep.subr.bf16.mxu1 %v4521_v29  ;;  %v331_v23 = vld [vmem:[#allocation5 + $0x70] sm:$0xff]  ;;  %v328_v24 = vld [vmem:[#allocation5 + $0x58] sm:$0xff]  ;;  %v4322_v29 = vcombine.low %v319_v11, %v323_v12 }
  0xff   : > { %v4333_v36 = vcombine.high %v328_v24, %v332_v27  ;;  %v4332_v38 = vcombine.low %v328_v24, %v332_v27  ;;  %v380_v12 = vld [vmem:[#allocation5 + $0x1f8] sm:$0xff]  ;;  %v395_v27 = vld [vmem:[#allocation5 + $0x270] sm:$0xff] }
 0x101   : > { %1957 = vmatpush1.bf16.msra.mxu0 %v4518_v31  ;;  %2043 = vmatpush1.bf16.msra.mxu1 %v4520_v32  ;;  %v339_v31 = vld [vmem:[#allocation5 + $0xb0] sm:$0xff]  ;;  %v4324_v32 = vcombine.low %v320_v13, %v324_v18 }
 0x102   : > { %1958 = vmatprep.subr.bf16.mxu0 %v4527_v33  ;;  %2044 = vmatprep.subr.bf16.mxu1 %v4529_v37  ;;  %v4331_v33 = vcombine.high %v327_v22, %v331_v23  ;;  %v4330_v37 = vcombine.low %v327_v22, %v331_v23  ;;  %v387_v18 = vld [vmem:[#allocation5 + $0x230] sm:$0xff] }
 0x103   : > { %v4387_v24 = vcombine.high %v383_v17, %v387_v18 }
 0x105   : > { %1959 = vmatpush1.bf16.msra.mxu0 %v4526_v39  ;;  %2045 = vmatpush1.bf16.msra.mxu1 %v4528_v40  ;;  %v4339_v39 = vcombine.high %v335_v30, %v339_v31  ;;  %v343_v40 = vld [vmem:[#allocation5 + $0xd0] sm:$0xff] }
 0x106   : > { %1960 = vmatprep.subr.bf16.mxu0 %v4535_v41  ;;  %2046 = vmatprep.subr.bf16.mxu1 %v4537_v45  ;;  %v347_v41 = vld [vmem:[#allocation5 + $0xf0] sm:$0xff]  ;;  %v4338_v45 = vcombine.low %v335_v30, %v339_v31  ;;  %v396_v31 = vld [vmem:[#allocation5 + $0x278] sm:$0xff] }
 0x109   : > { %1961 = vmatpush1.bf16.msra.mxu0 %v4534_v47  ;;  %2047 = vmatpush1.bf16.msra.mxu1 %v4536_v48  ;;  %v4347_v47 = vcombine.high %v343_v40, %v347_v41  ;;  %v351_v48 = vld [vmem:[#allocation5 + $0x110] sm:$0xff] }
 0x10a   : > { %1962 = vmatprep.subr.bf16.mxu0 %v4543_v49  ;;  %2048 = vmatprep.subr.bf16.mxu1 %v4545_v53  ;;  %v355_v49 = vld [vmem:[#allocation5 + $0x130] sm:$0xff]  ;;  %v4346_v53 = vcombine.low %v343_v40, %v347_v41 }
 0x10b   : > { %v4354_v61 = vcombine.low %v351_v48, %v355_v49 }
 0x10d   : > { %1963 = vmatpush1.bf16.msra.mxu0 %v4542_v55  ;;  %2049 = vmatpush1.bf16.msra.mxu1 %v4544_v56  ;;  %v4355_v55 = vcombine.high %v351_v48, %v355_v49  ;;  %v359_v56 = vld [vmem:[#allocation5 + $0x150] sm:$0xff] }
 0x10e   : > { %1964 = vmatprep.subr.bf16.mxu0 %v4551_v57  ;;  %2050 = vmatprep.subr.bf16.mxu1 %v4553_v62  ;;  %v360_v57 = vld [vmem:[#allocation5 + $0x158] sm:$0xff]  ;;  %v4356_v62 = vcombine.low %v352_v50, %v356_v52  ;;  %v4411_v50 = vcombine.high %v407_v43, %v411_v44  ;;  %v419_v52 = vld [vmem:[#allocation5 + $0x330] sm:$0xff] }
 0x10f   : > { %v4365_v3 = vcombine.high %v360_v57, %v364_v60 }
 0x111   : > { %1965 = vmatpush1.bf16.msra.mxu0 %v4550_v0  ;;  %2051 = vmatpush1.bf16.msra.mxu1 %v4552_v1  ;;  %v367_v0 = vld [vmem:[#allocation5 + $0x190] sm:$0xff] }
 0x112   : > { %1966 = vmatprep.subr.bf16.mxu0 %v4559_v2  ;;  %2052 = vmatprep.subr.bf16.mxu1 %v4561_v6  ;;  %v371_v1 = vld [vmem:[#allocation5 + $0x1b0] sm:$0xff]  ;;  %v368_v2 = vld [vmem:[#allocation5 + $0x198] sm:$0xff]  ;;  %v4364_v6 = vcombine.low %v360_v57, %v364_v60 }
 0x113   : > { %v4371_v7 = vcombine.high %v367_v0, %v371_v1  ;;  %v4373_v11 = vcombine.high %v368_v2, %v372_v4  ;;  %v4370_v13 = vcombine.low %v367_v0, %v371_v1  ;;  %v427_v60 = vld [vmem:[#allocation5 + $0x370] sm:$0xff] }
 0x115   : > { %1967 = vmatpush1.bf16.msra.mxu0 %v4558_v8  ;;  %2053 = vmatpush1.bf16.msra.mxu1 %v4560_v9  ;;  %v375_v8 = vld [vmem:[#allocation5 + $0x1d0] sm:$0xff] }
 0x116   : > { %1968 = vmatprep.subr.bf16.mxu0 %v4567_v10  ;;  %2054 = vmatprep.subr.bf16.mxu1 %v4569_v14  ;;  %v379_v9 = vld [vmem:[#allocation5 + $0x1f0] sm:$0xff]  ;;  %v376_v10 = vld [vmem:[#allocation5 + $0x1d8] sm:$0xff]  ;;  %v4372_v14 = vcombine.low %v368_v2, %v372_v4 }
 0x117   : > { %v4379_v16 = vcombine.high %v375_v8, %v379_v9  ;;  %v4378_v22 = vcombine.low %v375_v8, %v379_v9  ;;  %v4380_v23 = vcombine.low %v376_v10, %v380_v12  ;;  %v435_v4 = vld [vmem:[#allocation5 + $0x3b0] sm:$0xff] }
 0x119   : > { %1969 = vmatpush1.bf16.msra.mxu0 %v4566_v19  ;;  %2055 = vmatpush1.bf16.msra.mxu1 %v4568_v20  ;;  %v384_v19 = vld [vmem:[#allocation5 + $0x218] sm:$0xff]  ;;  %v4381_v20 = vcombine.high %v376_v10, %v380_v12  ;;  %v443_v12 = vld [vmem:[#allocation5 + $0x3f0] sm:$0xff] }
 0x11a   : > { %2067 = vmatprep.subr.bf16.mxu0 %v4323_v21  ;;  %2153 = vmatprep.subr.bf16.mxu1 %v4325_v26  ;;  %v388_v21 = vld [vmem:[#allocation5 + $0x238] sm:$0xff]  ;;  %v391_v26 = vld [vmem:[#allocation5 + $0x250] sm:$0xff] }
 0x11b   : > { %v4389_v30 = vcombine.high %v384_v19, %v388_v21  ;;  %v4395_v34 = vcombine.high %v391_v26, %v395_v27  ;;  %v4394_v40 = vcombine.low %v391_v26, %v395_v27  ;;  %v455_v27 = vld [vmem:[#allocation5 + $0x450] sm:$0xff] }
 0x11c   : > { %1971 = vmatmul.mubr.bf16.vlgmr.msra.gmra.mrb[0].mxu0 %v5831_v28  ;;  %2057 = vmatmul.mubr.bf16.vlgmr.msra.gmra.mrb[0].mxu1 %v5831_v28 }
 0x11d   : > { %2068 = vmatpush1.bf16.msra.mxu0 %v4322_v29  ;;  %2154 = vmatpush1.bf16.msra.mxu1 %v4324_v32  ;;  %v392_v29 = vld [vmem:[#allocation5 + $0x258] sm:$0xff]  ;;  %v4386_v32 = vcombine.low %v383_v17, %v387_v18  ;;  %v447_v18 = vld [vmem:[#allocation5 + $0x410] sm:$0xff] }
 0x11e   : > { %2069 = vmatprep.subr.bf16.mxu0 %v4331_v33  ;;  %2155 = vmatprep.subr.bf16.mxu1 %v4333_v36  ;;  %v4388_v33 = vcombine.low %v384_v19, %v388_v21  ;;  %v403_v36 = vld [vmem:[#allocation5 + $0x2b0] sm:$0xff]  ;;  %v4396_v41 = vcombine.low %v392_v29, %v396_v31 }
 0x11f   : > { %2099 = vmatprep.mubr.bf16.mxu0 %v5813_v58  ;;  %2185 = vmatprep.mubr.bf16.mxu1 %v5813_v58  ;;  %v363_v58 = vld [vmem:[#allocation5 + $0x170] sm:$0xff]  ;;  %v4402_v48 = vcombine.low %v399_v35, %v403_v36 }
 0x120   : > { %v4363_v63 = vcombine.high %v359_v56, %v363_v58  ;;  %v4362_v5 = vcombine.low %v359_v56, %v363_v58  ;;  %v4410_v56 = vcombine.low %v407_v43, %v411_v44  ;;  %v451_v19 = vld [vmem:[#allocation5 + $0x430] sm:$0xff] }
 0x121   : > { %2070 = vmatpush1.bf16.msra.mxu0 %v4330_v37  ;;  %2156 = vmatpush1.bf16.msra.mxu1 %v4332_v38  ;;  %v400_v37 = vld [vmem:[#allocation5 + $0x298] sm:$0xff]  ;;  %v4397_v38 = vcombine.high %v392_v29, %v396_v31  ;;  %v459_v29 = vld [vmem:[#allocation5 + $0x470] sm:$0xff]  ;;  %v4451_v31 = vcombine.high %v447_v18, %v451_v19 }
 0x122   : > { %2071 = vmatprep.subr.bf16.mxu0 %v4339_v39  ;;  %2157 = vmatprep.subr.bf16.mxu1 %v4341_v42  ;;  %v404_v39 = vld [vmem:[#allocation5 + $0x2b8] sm:$0xff]  ;;  %v4403_v42 = vcombine.high %v399_v35, %v403_v36  ;;  %v4450_v35 = vcombine.low %v447_v18, %v451_v19  ;;  %v4458_v43 = vcombine.low %v455_v27, %v459_v29 }
 0x123   : > { %v4404_v49 = vcombine.low %v400_v37, %v404_v39 }
 0x125   : > { %2072 = vmatpush1.bf16.msra.mxu0 %v4338_v45  ;;  %2158 = vmatpush1.bf16.msra.mxu1 %v4340_v46  ;;  %v408_v45 = vld [vmem:[#allocation5 + $0x2d8] sm:$0xff]  ;;  %v4405_v46 = vcombine.high %v400_v37, %v404_v39  ;;  %v4459_v37 = vcombine.high %v455_v27, %v459_v29  ;;  %v463_v39 = vld [vmem:[#allocation5 + $0x490] sm:$0xff] }
 0x126   : > { %2073 = vmatprep.subr.bf16.mxu0 %v4347_v47  ;;  %2159 = vmatprep.subr.bf16.mxu1 %v4349_v51  ;;  %v412_v47 = vld [vmem:[#allocation5 + $0x2f8] sm:$0xff]  ;;  %v415_v51 = vld [vmem:[#allocation5 + $0x310] sm:$0xff] }
 0x127   : > { %v4412_v58 = vcombine.low %v408_v45, %v412_v47  ;;  %v4419_v57 = vcombine.high %v415_v51, %v419_v52  ;;  %v4418_v0 = vcombine.low %v415_v51, %v419_v52 }
 0x129   : > { %2074 = vmatpush1.bf16.msra.mxu0 %v4346_v53  ;;  %2160 = vmatpush1.bf16.msra.mxu1 %v4348_v54  ;;  %v416_v53 = vld [vmem:[#allocation5 + $0x318] sm:$0xff]  ;;  %v4413_v54 = vcombine.high %v408_v45, %v412_v47  ;;  %v471_v47 = vld [vmem:[#allocation5 + $0x4d0] sm:$0xff] }
 0x12a   : > { %2075 = vmatprep.subr.bf16.mxu0 %v4355_v55  ;;  %2161 = vmatprep.subr.bf16.mxu1 %v4357_v59  ;;  %v420_v55 = vld [vmem:[#allocation5 + $0x338] sm:$0xff]  ;;  %v423_v59 = vld [vmem:[#allocation5 + $0x350] sm:$0xff] }
 0x12b   : > { %v4420_v1 = vcombine.low %v416_v53, %v420_v55  ;;  %v4427_v2 = vcombine.high %v423_v59, %v427_v60  ;;  %v4426_v8 = vcombine.low %v423_v59, %v427_v60 }
 0x12d   : > { %2076 = vmatpush1.bf16.msra.mxu0 %v4354_v61  ;;  %2162 = vmatpush1.bf16.msra.mxu1 %v4356_v62  ;;  %v424_v61 = vld [vmem:[#allocation5 + $0x358] sm:$0xff]  ;;  %v4421_v62 = vcombine.high %v416_v53, %v420_v55  ;;  %v483_v55 = vld [vmem:[#allocation5 + $0x530] sm:$0xff] }
 0x12e   : > { %2077 = vmatprep.subr.bf16.mxu0 %v4363_v63  ;;  %2163 = vmatprep.subr.bf16.mxu1 %v4365_v3  ;;  %v428_v63 = vld [vmem:[#allocation5 + $0x378] sm:$0xff]  ;;  %v431_v3 = vld [vmem:[#allocation5 + $0x390] sm:$0xff] }
 0x12f   : > { %v4428_v9 = vcombine.low %v424_v61, %v428_v63  ;;  %v4435_v10 = vcombine.high %v431_v3, %v435_v4  ;;  %v4434_v17 = vcombine.low %v431_v3, %v435_v4 }
 0x131   : > { %2078 = vmatpush1.bf16.msra.mxu0 %v4362_v5  ;;  %2164 = vmatpush1.bf16.msra.mxu1 %v4364_v6  ;;  %v432_v5 = vld [vmem:[#allocation5 + $0x398] sm:$0xff]  ;;  %v4429_v6 = vcombine.high %v424_v61, %v428_v63  ;;  %v487_v61 = vld [vmem:[#allocation5 + $0x550] sm:$0xff] }
 0x132   : > { %2079 = vmatprep.subr.bf16.mxu0 %v4371_v7  ;;  %2165 = vmatprep.subr.bf16.mxu1 %v4373_v11  ;;  %v436_v7 = vld [vmem:[#allocation5 + $0x3b8] sm:$0xff]  ;;  %v439_v11 = vld [vmem:[#allocation5 + $0x3d0] sm:$0xff] }
 0x133   : > { %v4443_v21 = vcombine.high %v439_v11, %v443_v12  ;;  %v4442_v26 = vcombine.low %v439_v11, %v443_v12  ;;  %v488_v63 = vld [vmem:[#allocation5 + $0x558] sm:$0xff] }
 0x135   : > { %2080 = vmatpush1.bf16.msra.mxu0 %v4370_v13  ;;  %2166 = vmatpush1.bf16.msra.mxu1 %v4372_v14  ;;  %v440_v13 = vld [vmem:[#allocation5 + $0x3d8] sm:$0xff]  ;;  %v4437_v14 = vcombine.high %v432_v5, %v436_v7 }
 0x136   : > { %2081 = vmatprep.subr.bf16.mxu0 %v4379_v16  ;;  %2167 = vmatprep.subr.bf16.mxu1 %v4381_v20  ;;  %v444_v16 = vld [vmem:[#allocation5 + $0x3f8] sm:$0xff]  ;;  %v4436_v20 = vcombine.low %v432_v5, %v436_v7  ;;  %v495_v5 = vld [vmem:[#allocation5 + $0x590] sm:$0xff] }
 0x137   : > { %v496_v7 = vld [vmem:[#allocation5 + $0x598] sm:$0xff] }
 0x139   : > { %2082 = vmatpush1.bf16.msra.mxu0 %v4378_v22  ;;  %2168 = vmatpush1.bf16.msra.mxu1 %v4380_v23  ;;  %v448_v22 = vld [vmem:[#allocation5 + $0x418] sm:$0xff] }
 0x13a   : > { %2083 = vmatprep.subr.bf16.mxu0 %v4387_v24  ;;  %2169 = vmatprep.subr.bf16.mxu1 %v4389_v30  ;;  %v452_v23 = vld [vmem:[#allocation5 + $0x438] sm:$0xff]  ;;  %v4445_v24 = vcombine.high %v440_v13, %v444_v16  ;;  %v4444_v30 = vcombine.low %v440_v13, %v444_v16  ;;  %v503_v13 = vld [vmem:[#allocation5 + $0x5d0] sm:$0xff] }
 0x13b   : > { %v4452_v36 = vcombine.low %v448_v22, %v452_v23  ;;  %v504_v16 = vld [vmem:[#allocation5 + $0x5d8] sm:$0xff] }
 0x13d   : > { %2084 = vmatpush1.bf16.msra.mxu0 %v4386_v32  ;;  %2170 = vmatpush1.bf16.msra.mxu1 %v4388_v33  ;;  %v456_v32 = vld [vmem:[#allocation5 + $0x458] sm:$0xff] }
 0x13e   : > { %2085 = vmatprep.subr.bf16.mxu0 %v4395_v34  ;;  %2171 = vmatprep.subr.bf16.mxu1 %v4397_v38  ;;  %v460_v33 = vld [vmem:[#allocation5 + $0x478] sm:$0xff]  ;;  %v4453_v34 = vcombine.high %v448_v22, %v452_v23  ;;  %v511_v22 = vld [vmem:[#allocation5 + $0x610] sm:$0xff] }
 0x13f   : > { %v4461_v38 = vcombine.high %v456_v32, %v460_v33  ;;  %v4460_v44 = vcombine.low %v456_v32, %v460_v33  ;;  %v515_v23 = vld [vmem:[#allocation5 + $0x630] sm:$0xff] }
 0x140   : > { %v519_v32 = vld [vmem:[#allocation5 + $0x650] sm:$0xff] }
 0x141   : > { %2086 = vmatpush1.bf16.msra.mxu0 %v4394_v40  ;;  %2172 = vmatpush1.bf16.msra.mxu1 %v4396_v41  ;;  %v467_v40 = vld [vmem:[#allocation5 + $0x4b0] sm:$0xff]  ;;  %v464_v41 = vld [vmem:[#allocation5 + $0x498] sm:$0xff] }
 0x142   : > { %2087 = vmatprep.subr.bf16.mxu0 %v4403_v42  ;;  %2173 = vmatprep.subr.bf16.mxu1 %v4405_v46  ;;  %v468_v42 = vld [vmem:[#allocation5 + $0x4b8] sm:$0xff]  ;;  %v4467_v45 = vcombine.high %v463_v39, %v467_v40  ;;  %v4466_v51 = vcombine.low %v463_v39, %v467_v40  ;;  %v523_v33 = vld [vmem:[#allocation5 + $0x670] sm:$0xff] }
 0x143   : > { %v4469_v46 = vcombine.high %v464_v41, %v468_v42  ;;  %v527_v40 = vld [vmem:[#allocation5 + $0x690] sm:$0xff] }
 0x145   : > { %2088 = vmatpush1.bf16.msra.mxu0 %v4402_v48  ;;  %2174 = vmatpush1.bf16.msra.mxu1 %v4404_v49  ;;  %v475_v48 = vld [vmem:[#allocation5 + $0x4f0] sm:$0xff]  ;;  %v472_v49 = vld [vmem:[#allocation5 + $0x4d8] sm:$0xff] }
 0x146   : > { %2089 = vmatprep.subr.bf16.mxu0 %v4411_v50  ;;  %2175 = vmatprep.subr.bf16.mxu1 %v4413_v54  ;;  %v476_v50 = vld [vmem:[#allocation5 + $0x4f8] sm:$0xff]  ;;  %v4475_v52 = vcombine.high %v471_v47, %v475_v48  ;;  %v479_v54 = vld [vmem:[#allocation5 + $0x510] sm:$0xff] }
 0x147   : > { %v4477_v53 = vcombine.high %v472_v49, %v476_v50  ;;  %v4476_v59 = vcombine.low %v472_v49, %v476_v50  ;;  %v4483_v60 = vcombine.high %v479_v54, %v483_v55  ;;  %v539_v49 = vld [vmem:[#allocation5 + $0x6f0] sm:$0xff]  ;;  %v536_v50 = vld [vmem:[#allocation5 + $0x6d8] sm:$0xff] }
 0x149   : > { %2090 = vmatpush1.bf16.msra.mxu0 %v4410_v56  ;;  %2176 = vmatpush1.bf16.msra.mxu1 %v4412_v58  ;;  %v480_v56 = vld [vmem:[#allocation5 + $0x518] sm:$0xff] }
 0x14a   : > { %2091 = vmatprep.subr.bf16.mxu0 %v4419_v57  ;;  %2177 = vmatprep.subr.bf16.mxu1 %v4421_v62  ;;  %v484_v58 = vld [vmem:[#allocation5 + $0x538] sm:$0xff]  ;;  %v4474_v57 = vcombine.low %v471_v47, %v475_v48  ;;  %v491_v62 = vld [vmem:[#allocation5 + $0x570] sm:$0xff] }
 0x14b   : > { %v4491_v3 = vcombine.high %v487_v61, %v491_v62  ;;  %v535_v48 = vld [vmem:[#allocation5 + $0x6d0] sm:$0xff] }
 0x14d   : > { %2092 = vmatpush1.bf16.msra.mxu0 %v4418_v0  ;;  %2178 = vmatpush1.bf16.msra.mxu1 %v4420_v1  ;;  %v492_v0 = vld [vmem:[#allocation5 + $0x578] sm:$0xff]  ;;  %v4482_v1 = vcombine.low %v479_v54, %v483_v55  ;;  %v543_v55 = vld [vmem:[#allocation5 + $0x710] sm:$0xff] }
 0x14e   : > { %2093 = vmatprep.subr.bf16.mxu0 %v4427_v2  ;;  %2179 = vmatprep.subr.bf16.mxu1 %v4429_v6  ;;  %v4484_v2 = vcombine.low %v480_v56, %v484_v58  ;;  %v4493_v4 = vcombine.high %v488_v63, %v492_v0  ;;  %v499_v6 = vld [vmem:[#allocation5 + $0x5b0] sm:$0xff] }
 0x14f   : > { %v4499_v11 = vcombine.high %v495_v5, %v499_v6  ;;  %v4498_v18 = vcombine.low %v495_v5, %v499_v6  ;;  %v559_v6 = vld [vmem:[#allocation5 + $0x790] sm:$0xff] }
 0x151   : > { %2094 = vmatpush1.bf16.msra.mxu0 %v4426_v8  ;;  %2180 = vmatpush1.bf16.msra.mxu1 %v4428_v9  ;;  %v500_v8 = vld [vmem:[#allocation5 + $0x5b8] sm:$0xff]  ;;  %v4490_v9 = vcombine.low %v487_v61, %v491_v62  ;;  %v551_v62 = vld [vmem:[#allocation5 + $0x750] sm:$0xff] }
 0x152   : > { %2095 = vmatprep.subr.bf16.mxu0 %v4435_v10  ;;  %2181 = vmatprep.subr.bf16.mxu1 %v4437_v14  ;;  %v4492_v10 = vcombine.low %v488_v63, %v492_v0  ;;  %v4501_v12 = vcombine.high %v496_v7, %v500_v8  ;;  %v507_v14 = vld [vmem:[#allocation5 + $0x5f0] sm:$0xff]  ;;  %v4500_v19 = vcombine.low %v496_v7, %v500_v8  ;;  %v552_v0 = vld [vmem:[#allocation5 + $0x758] sm:$0xff] }
 0x153   : > { %v4506_v27 = vcombine.low %v503_v13, %v507_v14  ;;  %v555_v63 = vld [vmem:[#allocation5 + $0x770] sm:$0xff]  ;;  %v560_v8 = vld [vmem:[#allocation5 + $0x798] sm:$0xff] }
 0x154   : > { %v563_v7 = vld [vmem:[#allocation5 + $0x7b0] sm:$0xff] }
 0x155   : > { %2096 = vmatpush1.bf16.msra.mxu0 %v4434_v17  ;;  %2182 = vmatpush1.bf16.msra.mxu1 %v4436_v20  ;;  %v508_v17 = vld [vmem:[#allocation5 + $0x5f8] sm:$0xff]  ;;  %v4507_v20 = vcombine.high %v503_v13, %v507_v14  ;;  %v567_v14 = vld [vmem:[#allocation5 + $0x7d0] sm:$0xff] }
 0x156   : > { %2097 = vmatprep.subr.bf16.mxu0 %v4443_v21  ;;  %2183 = vmatprep.subr.bf16.mxu1 %v4445_v24  ;;  %v4509_v21 = vcombine.high %v504_v16, %v508_v17  ;;  %v512_v24 = vld [vmem:[#allocation5 + $0x618] sm:$0xff]  ;;  %v4508_v29 = vcombine.low %v504_v16, %v508_v17  ;;  %v571_v16 = vld [vmem:[#allocation5 + $0x7f0] sm:$0xff] }
 0x157   : > { %v568_v17 = vld [vmem:[#allocation5 + $0x7d8] sm:$0xff] }
 0x159   : > { %2098 = vmatpush1.bf16.msra.mxu0 %v4442_v26  ;;  %2184 = vmatpush1.bf16.msra.mxu1 %v4444_v30  ;;  %v516_v26 = vld [vmem:[#allocation5 + $0x638] sm:$0xff]  ;;  %v4515_v30 = vcombine.high %v511_v22, %v515_v23 }
 0x15a   : > { %2110 = vmatprep.subr.bf16.mxu0 %v4451_v31  ;;  %2196 = vmatprep.subr.bf16.mxu1 %v4453_v34  ;;  %v4517_v31 = vcombine.high %v512_v24, %v516_v26  ;;  %v520_v34 = vld [vmem:[#allocation5 + $0x658] sm:$0xff] }
 0x15c   : > { %2100 = vmatmul.mubr.bf16.vlgmr.msra.gmra.mrb[4].mxu0 %v5819_v15  ;;  %2186 = vmatmul.mubr.bf16.vlgmr.msra.gmra.mrb[4].mxu1 %v5819_v15  ;;  %v4468_v15 = vcombine.low %v464_v41, %v468_v42  ;;  %v531_v41 = vld [vmem:[#allocation5 + $0x6b0] sm:$0xff]  ;;  %v528_v42 = vld [vmem:[#allocation5 + $0x698] sm:$0xff] }
 0x15d   : > { %2111 = vmatpush1.bf16.msra.mxu0 %v4450_v35  ;;  %2197 = vmatpush1.bf16.msra.mxu1 %v4452_v36  ;;  %v524_v35 = vld [vmem:[#allocation5 + $0x678] sm:$0xff]  ;;  %v4514_v36 = vcombine.low %v511_v22, %v515_v23  ;;  %v4570_v23 = vcombine.low %v567_v14, %v571_v16 }
 0x15e   : > { %2112 = vmatprep.subr.bf16.mxu0 %v4459_v37  ;;  %2198 = vmatprep.subr.bf16.mxu1 %v4461_v38  ;;  %v4516_v37 = vcombine.low %v512_v24, %v516_v26  ;;  %v4523_v38 = vcombine.high %v519_v32, %v523_v33  ;;  %v4525_v39 = vcombine.high %v520_v34, %v524_v35  ;;  %v4991_v26 = vld [vmem:[#allocation8 + $0x4] ss:$16 sps:$4 sm:$0xff]  }
 0x15f   : > { %2142 = vmatprep.mubr.bf16.mxu0 %v5823_v25  ;;  %2228 = vmatprep.mubr.bf16.mxu1 %v5823_v25  ;;  %v4485_v25 = vcombine.high %v480_v56, %v484_v58  ;;  %v547_v56 = vld [vmem:[#allocation5 + $0x730] sm:$0xff]  ;;  %v544_v58 = vld [vmem:[#allocation5 + $0x718] sm:$0xff] }
 0x161   : > { %2113 = vmatpush1.bf16.msra.mxu0 %v4458_v43  ;;  %2199 = vmatpush1.bf16.msra.mxu1 %v4460_v44  ;;  %v532_v43 = vld [vmem:[#allocation5 + $0x6b8] sm:$0xff]  ;;  %v4522_v44 = vcombine.low %v519_v32, %v523_v33  ;;  %v5000_v32 = vld [vmem:[#allocation8 + $0x2c] ss:$16 sps:$4 sm:$0xff]  }
 0x162   : > { %2114 = vmatprep.subr.bf16.mxu0 %v4467_v45  ;;  %2200 = vmatprep.subr.bf16.mxu1 %v4469_v46  ;;  %v4524_v45 = vcombine.low %v520_v34, %v524_v35  ;;  %v4531_v46 = vcombine.high %v527_v40, %v531_v41  ;;  %v4533_v47 = vcombine.high %v528_v42, %v532_v43  ;;  %v4995_v33 = vld [vmem:[#allocation8 + $0x20] ss:$16 sps:$4 sm:$0xff]   ;;  %v4998_v34 = vld [vmem:[#allocation8 + $0x28] ss:$16 sps:$4 sm:$0xff]   ;;  %v5003_v35 = vld [vmem:[#allocation8 + $0x44] ss:$16 sps:$4 sm:$0xff]  }
 0x165   : > { %2115 = vmatpush1.bf16.msra.mxu0 %v4466_v51  ;;  %2201 = vmatpush1.bf16.msra.mxu1 %v4468_v15  ;;  %v540_v51 = vld [vmem:[#allocation5 + $0x6f8] sm:$0xff]  ;;  %v4530_v15 = vcombine.low %v527_v40, %v531_v41  ;;  %v5012_v40 = vld [vmem:[#allocation8 + $0x6c] ss:$16 sps:$4 sm:$0xff]  }
 0x166   : > { %2116 = vmatprep.subr.bf16.mxu0 %v4475_v52  ;;  %2202 = vmatprep.subr.bf16.mxu1 %v4477_v53  ;;  %v4532_v52 = vcombine.low %v528_v42, %v532_v43  ;;  %v4539_v53 = vcombine.high %v535_v48, %v539_v49  ;;  %v4541_v54 = vcombine.high %v536_v50, %v540_v51  ;;  %v5007_v41 = vld [vmem:[#allocation8 + $0x60] ss:$16 sps:$4 sm:$0xff]   ;;  %v5015_v42 = vld [vmem:[#allocation8 + $0x84] ss:$16 sps:$4 sm:$0xff]   ;;  %v5018_v43 = vld [vmem:[#allocation8 + $0x8c] ss:$16 sps:$4 sm:$0xff]  }
 0x169   : > { %2117 = vmatpush1.bf16.msra.mxu0 %v4474_v57  ;;  %2203 = vmatpush1.bf16.msra.mxu1 %v4476_v59  ;;  %v548_v57 = vld [vmem:[#allocation5 + $0x738] sm:$0xff]  ;;  %v4538_v59 = vcombine.low %v535_v48, %v539_v49  ;;  %v5022_v49 = vld [vmem:[#allocation8 + $0xa8] ss:$16 sps:$4 sm:$0xff]  }
 0x16a   : > { %2118 = vmatprep.subr.bf16.mxu0 %v4483_v60  ;;  %2204 = vmatprep.subr.bf16.mxu1 %v4485_v25  ;;  %v4540_v60 = vcombine.low %v536_v50, %v540_v51  ;;  %v4547_v25 = vcombine.high %v543_v55, %v547_v56  ;;  %v4549_v61 = vcombine.high %v544_v58, %v548_v57  ;;  %v5019_v48 = vld [vmem:[#allocation8 + $0xa0] ss:$16 sps:$4 sm:$0xff]   ;;  %v5027_v50 = vld [vmem:[#allocation8 + $0xc4] ss:$16 sps:$4 sm:$0xff]   ;;  %v5030_v51 = vld [vmem:[#allocation8 + $0xcc] ss:$16 sps:$4 sm:$0xff]  }
 0x16d   : > { %2119 = vmatpush1.bf16.msra.mxu0 %v4482_v1  ;;  %2205 = vmatpush1.bf16.msra.mxu1 %v4484_v2  ;;  %v556_v1 = vld [vmem:[#allocation5 + $0x778] sm:$0xff]  ;;  %v4546_v2 = vcombine.low %v543_v55, %v547_v56  ;;  %v5034_v56 = vld [vmem:[#allocation8 + $0xe8] ss:$16 sps:$4 sm:$0xff]  }
 0x16e   : > { %2120 = vmatprep.subr.bf16.mxu0 %v4491_v3  ;;  %2206 = vmatprep.subr.bf16.mxu1 %v4493_v4  ;;  %v4548_v3 = vcombine.low %v544_v58, %v548_v57  ;;  %v4555_v4 = vcombine.high %v551_v62, %v555_v63  ;;  %v4557_v5 = vcombine.high %v552_v0, %v556_v1  ;;  %v5031_v55 = vld [vmem:[#allocation8 + $0xe0] ss:$16 sps:$4 sm:$0xff]   ;;  %v5039_v58 = vld [vmem:[#allocation8 + $0x104] ss:$16 sps:$4 sm:$0xff]   ;;  %v5042_v57 = vld [vmem:[#allocation8 + $0x10c] ss:$16 sps:$4 sm:$0xff]  }
 0x171   : > { %2121 = vmatpush1.bf16.msra.mxu0 %v4490_v9  ;;  %2207 = vmatpush1.bf16.msra.mxu1 %v4492_v10  ;;  %v564_v9 = vld [vmem:[#allocation5 + $0x7b8] sm:$0xff]  ;;  %v4554_v10 = vcombine.low %v551_v62, %v555_v63  ;;  %v5046_v63 = vld [vmem:[#allocation8 + $0x128] ss:$16 sps:$4 sm:$0xff]  }
 0x172   : > { %2122 = vmatprep.subr.bf16.mxu0 %v4499_v11  ;;  %2208 = vmatprep.subr.bf16.mxu1 %v4501_v12  ;;  %v4556_v11 = vcombine.low %v552_v0, %v556_v1  ;;  %v4563_v12 = vcombine.high %v559_v6, %v563_v7  ;;  %v4565_v13 = vcombine.high %v560_v8, %v564_v9  ;;  %v5043_v62 = vld [vmem:[#allocation8 + $0x120] ss:$16 sps:$4 sm:$0xff]   ;;  %v5051_v0 = vld [vmem:[#allocation8 + $0x144] ss:$16 sps:$4 sm:$0xff]   ;;  %v5054_v1 = vld [vmem:[#allocation8 + $0x14c] ss:$16 sps:$4 sm:$0xff]  }
 0x175   : > { %2123 = vmatpush1.bf16.msra.mxu0 %v4498_v18  ;;  %2209 = vmatpush1.bf16.msra.mxu1 %v4500_v19  ;;  %v572_v18 = vld [vmem:[#allocation5 + $0x7f8] sm:$0xff]  ;;  %v4562_v19 = vcombine.low %v559_v6, %v563_v7  ;;  %v5058_v7 = vld [vmem:[#allocation8 + $0x168] ss:$16 sps:$4 sm:$0xff]  }
 0x176   : > { %2124 = vmatprep.subr.bf16.mxu0 %v4507_v20  ;;  %2210 = vmatprep.subr.bf16.mxu1 %v4509_v21  ;;  %v4564_v20 = vcombine.low %v560_v8, %v564_v9  ;;  %v4571_v21 = vcombine.high %v567_v14, %v571_v16  ;;  %v4573_v22 = vcombine.high %v568_v17, %v572_v18  ;;  %v5055_v6 = vld [vmem:[#allocation8 + $0x160] ss:$16 sps:$4 sm:$0xff]   ;;  %v5063_v8 = vld [vmem:[#allocation8 + $0x184] ss:$16 sps:$4 sm:$0xff]   ;;  %v5066_v9 = vld [vmem:[#allocation8 + $0x18c] ss:$16 sps:$4 sm:$0xff]  }
 0x177   : > { %v4572_v24 = vcombine.low %v568_v17, %v572_v18  ;;  %v5067_v14 = vld [vmem:[#allocation8 + $0x1a0] ss:$16 sps:$4 sm:$0xff]   ;;  %v5070_v16 = vld [vmem:[#allocation8 + $0x1a8] ss:$16 sps:$4 sm:$0xff]   ;;  %v5075_v17 = vld [vmem:[#allocation8 + $0x1c4] ss:$16 sps:$4 sm:$0xff]  }
 0x178   : > { %v5078_v18 = vld [vmem:[#allocation8 + $0x1cc] ss:$16 sps:$4 sm:$0xff]  }
 0x179   : > { %2125 = vmatpush1.bf16.msra.mxu0 %v4506_v27  ;;  %2211 = vmatpush1.bf16.msra.mxu1 %v4508_v29  ;;  %v4994_v27 = vld [vmem:[#allocation8 + $0xc] ss:$16 sps:$4 sm:$0xff]   ;;  %v4989_v29 = vld [vmem:[#allocation8] ss:$16 sps:$4 sm:$0xff]  }
 0x17a   : > { %2126 = vmatprep.subr.bf16.mxu0 %v4515_v30  ;;  %2212 = vmatprep.subr.bf16.mxu1 %v4517_v31  ;;  %v4992_v30 = vld [vmem:[#allocation8 + $0x8] ss:$16 sps:$4 sm:$0xff]   ;;  %v4997_v31 = vld [vmem:[#allocation8 + $0x24] ss:$16 sps:$4 sm:$0xff]  }
 0x17d   : > { %2127 = vmatpush1.bf16.msra.mxu0 %v4514_v36  ;;  %2213 = vmatpush1.bf16.msra.mxu1 %v4516_v37  ;;  %v5006_v36 = vld [vmem:[#allocation8 + $0x4c] ss:$16 sps:$4 sm:$0xff]   ;;  %v5001_v37 = vld [vmem:[#allocation8 + $0x40] ss:$16 sps:$4 sm:$0xff]  }
 0x17e   : > { %2128 = vmatprep.subr.bf16.mxu0 %v4523_v38  ;;  %2214 = vmatprep.subr.bf16.mxu1 %v4525_v39  ;;  %v5004_v38 = vld [vmem:[#allocation8 + $0x48] ss:$16 sps:$4 sm:$0xff]   ;;  %v5009_v39 = vld [vmem:[#allocation8 + $0x64] ss:$16 sps:$4 sm:$0xff]  }
 0x181   : > { %2129 = vmatpush1.bf16.msra.mxu0 %v4522_v44  ;;  %2215 = vmatpush1.bf16.msra.mxu1 %v4524_v45  ;;  %v5013_v44 = vld [vmem:[#allocation8 + $0x80] ss:$16 sps:$4 sm:$0xff]   ;;  %v5016_v45 = vld [vmem:[#allocation8 + $0x88] ss:$16 sps:$4 sm:$0xff]  }
 0x182   : > { %2130 = vmatprep.subr.bf16.mxu0 %v4531_v46  ;;  %2216 = vmatprep.subr.bf16.mxu1 %v4533_v47  ;;  %v5021_v46 = vld [vmem:[#allocation8 + $0xa4] ss:$16 sps:$4 sm:$0xff]   ;;  %v5024_v47 = vld [vmem:[#allocation8 + $0xac] ss:$16 sps:$4 sm:$0xff]  }
 0x185   : > { %2131 = vmatpush1.bf16.msra.mxu0 %v4530_v15  ;;  %2217 = vmatpush1.bf16.msra.mxu1 %v4532_v52  ;;  %v5025_v15 = vld [vmem:[#allocation8 + $0xc0] ss:$16 sps:$4 sm:$0xff]   ;;  %v5028_v52 = vld [vmem:[#allocation8 + $0xc8] ss:$16 sps:$4 sm:$0xff]  }
 0x186   : > { %2132 = vmatprep.subr.bf16.mxu0 %v4539_v53  ;;  %2218 = vmatprep.subr.bf16.mxu1 %v4541_v54  ;;  %v5033_v53 = vld [vmem:[#allocation8 + $0xe4] ss:$16 sps:$4 sm:$0xff]   ;;  %v5036_v54 = vld [vmem:[#allocation8 + $0xec] ss:$16 sps:$4 sm:$0xff]  }
 0x189   : > { %2133 = vmatpush1.bf16.msra.mxu0 %v4538_v59  ;;  %2219 = vmatpush1.bf16.msra.mxu1 %v4540_v60  ;;  %v5037_v59 = vld [vmem:[#allocation8 + $0x100] ss:$16 sps:$4 sm:$0xff]   ;;  %v5040_v60 = vld [vmem:[#allocation8 + $0x108] ss:$16 sps:$4 sm:$0xff]  }
 0x18a   : > { %2134 = vmatprep.subr.bf16.mxu0 %v4547_v25  ;;  %2220 = vmatprep.subr.bf16.mxu1 %v4549_v61  ;;  %v5045_v25 = vld [vmem:[#allocation8 + $0x124] ss:$16 sps:$4 sm:$0xff]   ;;  %v5048_v61 = vld [vmem:[#allocation8 + $0x12c] ss:$16 sps:$4 sm:$0xff]  }
 0x18d   : > { %2135 = vmatpush1.bf16.msra.mxu0 %v4546_v2  ;;  %2221 = vmatpush1.bf16.msra.mxu1 %v4548_v3  ;;  %v5049_v2 = vld [vmem:[#allocation8 + $0x140] ss:$16 sps:$4 sm:$0xff]   ;;  %v5052_v3 = vld [vmem:[#allocation8 + $0x148] ss:$16 sps:$4 sm:$0xff]  }
 0x18e   : > { %2136 = vmatprep.subr.bf16.mxu0 %v4555_v4  ;;  %2222 = vmatprep.subr.bf16.mxu1 %v4557_v5  ;;  %v5057_v4 = vld [vmem:[#allocation8 + $0x164] ss:$16 sps:$4 sm:$0xff]   ;;  %v5060_v5 = vld [vmem:[#allocation8 + $0x16c] ss:$16 sps:$4 sm:$0xff]  }
 0x191   : > { %2137 = vmatpush1.bf16.msra.mxu0 %v4554_v10  ;;  %2223 = vmatpush1.bf16.msra.mxu1 %v4556_v11  ;;  %v5061_v10 = vld [vmem:[#allocation8 + $0x180] ss:$16 sps:$4 sm:$0xff]   ;;  %v5064_v11 = vld [vmem:[#allocation8 + $0x188] ss:$16 sps:$4 sm:$0xff]  }
 0x192   : > { %2138 = vmatprep.subr.bf16.mxu0 %v4563_v12  ;;  %2224 = vmatprep.subr.bf16.mxu1 %v4565_v13  ;;  %v5069_v12 = vld [vmem:[#allocation8 + $0x1a4] ss:$16 sps:$4 sm:$0xff]   ;;  %v5072_v13 = vld [vmem:[#allocation8 + $0x1ac] ss:$16 sps:$4 sm:$0xff]  }
 0x195   : > { %2139 = vmatpush1.bf16.msra.mxu0 %v4562_v19  ;;  %2225 = vmatpush1.bf16.msra.mxu1 %v4564_v20  ;;  %v5073_v19 = vld [vmem:[#allocation8 + $0x1c0] ss:$16 sps:$4 sm:$0xff]   ;;  %v5076_v20 = vld [vmem:[#allocation8 + $0x1c8] ss:$16 sps:$4 sm:$0xff]  }
 0x196   : > { %2140 = vmatprep.subr.bf16.mxu0 %v4571_v21  ;;  %2226 = vmatprep.subr.bf16.mxu1 %v4573_v22  ;;  %v5081_v21 = vld [vmem:[#allocation8 + $0x1e4] ss:$16 sps:$4 sm:$0xff]   ;;  %v5084_v22 = vld [vmem:[#allocation8 + $0x1ec] ss:$16 sps:$4 sm:$0xff]  }
 0x199   : > { %2141 = vmatpush1.bf16.msra.mxu0 %v4570_v23  ;;  %2227 = vmatpush1.bf16.msra.mxu1 %v4572_v24  ;;  %v5079_v23 = vld [vmem:[#allocation8 + $0x1e0] ss:$16 sps:$4 sm:$0xff]   ;;  %v5082_v24 = vld [vmem:[#allocation8 + $0x1e8] ss:$16 sps:$4 sm:$0xff]  }
 0x19a   : > { %3821 = vmatprep.subr.bf16.mxu0 %v4991_v26  ;;  %3993 = vmatprep.subr.bf16.mxu1 %v4994_v27  ;;  %v5087_v26 = vld [vmem:[#allocation8 + $0x204] ss:$16 sps:$4 sm:$0xff]   ;;  %v5090_v27 = vld [vmem:[#allocation8 + $0x20c] ss:$16 sps:$4 sm:$0xff]  }
 0x19c   : > { %2143 = vmatmul.mubr.bf16.vlgmr.msra.gmra.mrb[4].mxu0 %v5831_v28  ;;  %2229 = vmatmul.mubr.bf16.vlgmr.msra.gmra.mrb[4].mxu1 %v5831_v28  ;;  %v5010_v28 = vld [vmem:[#allocation8 + $0x68] ss:$16 sps:$4 sm:$0xff]  }
 0x19d   : > { %3822 = vmatpush1.bf16.msra.mxu0 %v4989_v29  ;;  %3994 = vmatpush1.bf16.msra.mxu1 %v4992_v30  ;;  %v575_v29 = vlaneseq }
 0x19e   : > { %3823 = vmatprep.subr.bf16.mxu0 %v4997_v31  ;;  %3995 = vmatprep.subr.bf16.mxu1 %v5000_v32  ;;  %v5846_v32 = vld [vmem:[#allocation7] sm:$0xff] }
 0x19f   : > { %v5843_v30 = vshrl.u32 %v575_v29, 7  ;;  %v5124_v29 = vld [vmem:[#allocation8 + $0x2c8] ss:$16 sps:$4 sm:$0xff]  }
 0x1a1   : > { %3824 = vmatpush1.bf16.msra.mxu0 %v4995_v33  ;;  %3996 = vmatpush1.bf16.msra.mxu1 %v4998_v34  ;;  %v577_v31 = vsub.s32 0, %v5843_v30  ;;  %v585_v33 = vsub.s32 2, %v5843_v30  ;;  %v581_v34 = vsub.s32 1, %v5843_v30 }
 0x1a2   : > { %3825 = vmatprep.subr.bf16.mxu0 %v5003_v35  ;;  %3997 = vmatprep.subr.bf16.mxu1 %v5006_v36  ;;  %v589_v35 = vsub.s32 3, %v5843_v30 }
 0x1a3   : > { %v578_v36 = vrot.slane %v5846_v32, %v577_v31 }
 0x1a5   : > { %3826 = vmatpush1.bf16.msra.mxu0 %v5001_v37  ;;  %3998 = vmatpush1.bf16.msra.mxu1 %v5004_v38  ;;  %v586_v37 = vrot.slane %v5846_v32, %v585_v33  ;;  %v582_v38 = vrot.slane %v5846_v32, %v581_v34 }
 0x1a6   : > { %3827 = vmatprep.subr.bf16.mxu0 %v5009_v39  ;;  %3999 = vmatprep.subr.bf16.mxu1 %v5012_v40  ;;  %v590_v39 = vrot.slane %v5846_v32, %v589_v35 }
 0x1a9   : > { %3828 = vmatpush1.bf16.msra.mxu0 %v5007_v41  ;;  %4000 = vmatpush1.bf16.msra.mxu1 %v5010_v28 }
 0x1aa   : > { %3829 = vmatprep.subr.bf16.mxu0 %v5015_v42  ;;  %4001 = vmatprep.subr.bf16.mxu1 %v5018_v43 }
 0x1ad   : > { %3830 = vmatpush1.bf16.msra.mxu0 %v5013_v44  ;;  %4002 = vmatpush1.bf16.msra.mxu1 %v5016_v45 }
 0x1ae   : > { %3831 = vmatprep.subr.bf16.mxu0 %v5021_v46  ;;  %4003 = vmatprep.subr.bf16.mxu1 %v5024_v47 }
 0x1b1   : > { %3832 = vmatpush1.bf16.msra.mxu0 %v5019_v48  ;;  %4004 = vmatpush1.bf16.msra.mxu1 %v5022_v49 }
 0x1b2   : > { %3833 = vmatprep.subr.bf16.mxu0 %v5027_v50  ;;  %4005 = vmatprep.subr.bf16.mxu1 %v5030_v51 }
 0x1b5   : > { %3834 = vmatpush1.bf16.msra.mxu0 %v5025_v15  ;;  %4006 = vmatpush1.bf16.msra.mxu1 %v5028_v52 }
 0x1b6   : > { %3835 = vmatprep.subr.bf16.mxu0 %v5033_v53  ;;  %4007 = vmatprep.subr.bf16.mxu1 %v5036_v54 }
 0x1b9   : > { %3836 = vmatpush1.bf16.msra.mxu0 %v5031_v55  ;;  %4008 = vmatpush1.bf16.msra.mxu1 %v5034_v56 }
 0x1ba   : > { %3837 = vmatprep.subr.bf16.mxu0 %v5039_v58  ;;  %4009 = vmatprep.subr.bf16.mxu1 %v5042_v57 }
 0x1bd   : > { %3838 = vmatpush1.bf16.msra.mxu0 %v5037_v59  ;;  %4010 = vmatpush1.bf16.msra.mxu1 %v5040_v60 }
 0x1be   : > { %3839 = vmatprep.subr.bf16.mxu0 %v5045_v25  ;;  %4011 = vmatprep.subr.bf16.mxu1 %v5048_v61 }
 0x1c1   : > { %3840 = vmatpush1.bf16.msra.mxu0 %v5043_v62  ;;  %4012 = vmatpush1.bf16.msra.mxu1 %v5046_v63 }
 0x1c2   : > { %3841 = vmatprep.subr.bf16.mxu0 %v5051_v0  ;;  %4013 = vmatprep.subr.bf16.mxu1 %v5054_v1  ;;  %v5085_v0 = vld [vmem:[#allocation8 + $0x200] ss:$16 sps:$4 sm:$0xff]   ;;  %v5088_v1 = vld [vmem:[#allocation8 + $0x208] ss:$16 sps:$4 sm:$0xff]  }
 0x1c5   : > { %3842 = vmatpush1.bf16.msra.mxu0 %v5049_v2  ;;  %4014 = vmatpush1.bf16.msra.mxu1 %v5052_v3  ;;  %v5093_v3 = vld [vmem:[#allocation8 + $0x224] ss:$16 sps:$4 sm:$0xff]  }
 0x1c6   : > { %3843 = vmatprep.subr.bf16.mxu0 %v5057_v4  ;;  %4015 = vmatprep.subr.bf16.mxu1 %v5060_v5  ;;  %v5096_v4 = vld [vmem:[#allocation8 + $0x22c] ss:$16 sps:$4 sm:$0xff]   ;;  %v5091_v5 = vld [vmem:[#allocation8 + $0x220] ss:$16 sps:$4 sm:$0xff]  }
 0x1c9   : > { %3844 = vmatpush1.bf16.msra.mxu0 %v5055_v6  ;;  %4016 = vmatpush1.bf16.msra.mxu1 %v5058_v7  ;;  %v5094_v6 = vld [vmem:[#allocation8 + $0x228] ss:$16 sps:$4 sm:$0xff]   ;;  %v5099_v7 = vld [vmem:[#allocation8 + $0x244] ss:$16 sps:$4 sm:$0xff]  }
 0x1ca   : > { %3845 = vmatprep.subr.bf16.mxu0 %v5063_v8  ;;  %4017 = vmatprep.subr.bf16.mxu1 %v5066_v9  ;;  %v5102_v8 = vld [vmem:[#allocation8 + $0x24c] ss:$16 sps:$4 sm:$0xff]   ;;  %v5097_v9 = vld [vmem:[#allocation8 + $0x240] ss:$16 sps:$4 sm:$0xff]  }
 0x1cd   : > { %3846 = vmatpush1.bf16.msra.mxu0 %v5061_v10  ;;  %4018 = vmatpush1.bf16.msra.mxu1 %v5064_v11  ;;  %v5100_v10 = vld [vmem:[#allocation8 + $0x248] ss:$16 sps:$4 sm:$0xff]   ;;  %v5105_v11 = vld [vmem:[#allocation8 + $0x264] ss:$16 sps:$4 sm:$0xff]  }
 0x1ce   : > { %3847 = vmatprep.subr.bf16.mxu0 %v5069_v12  ;;  %4019 = vmatprep.subr.bf16.mxu1 %v5072_v13  ;;  %v5108_v12 = vld [vmem:[#allocation8 + $0x26c] ss:$16 sps:$4 sm:$0xff]   ;;  %v5103_v13 = vld [vmem:[#allocation8 + $0x260] ss:$16 sps:$4 sm:$0xff]  }
 0x1d1   : > { %3848 = vmatpush1.bf16.msra.mxu0 %v5067_v14  ;;  %4020 = vmatpush1.bf16.msra.mxu1 %v5070_v16  ;;  %v5106_v14 = vld [vmem:[#allocation8 + $0x268] ss:$16 sps:$4 sm:$0xff]   ;;  %v5111_v16 = vld [vmem:[#allocation8 + $0x284] ss:$16 sps:$4 sm:$0xff]  }
 0x1d2   : > { %3849 = vmatprep.subr.bf16.mxu0 %v5075_v17  ;;  %4021 = vmatprep.subr.bf16.mxu1 %v5078_v18  ;;  %v5114_v17 = vld [vmem:[#allocation8 + $0x28c] ss:$16 sps:$4 sm:$0xff]   ;;  %v5109_v18 = vld [vmem:[#allocation8 + $0x280] ss:$16 sps:$4 sm:$0xff]  }
 0x1d5   : > { %3850 = vmatpush1.bf16.msra.mxu0 %v5073_v19  ;;  %4022 = vmatpush1.bf16.msra.mxu1 %v5076_v20  ;;  %v5112_v19 = vld [vmem:[#allocation8 + $0x288] ss:$16 sps:$4 sm:$0xff]   ;;  %v5117_v20 = vld [vmem:[#allocation8 + $0x2a4] ss:$16 sps:$4 sm:$0xff]  }
 0x1d6   : > { %3851 = vmatprep.subr.bf16.mxu0 %v5081_v21  ;;  %4023 = vmatprep.subr.bf16.mxu1 %v5084_v22  ;;  %v5120_v21 = vld [vmem:[#allocation8 + $0x2ac] ss:$16 sps:$4 sm:$0xff]   ;;  %v5115_v22 = vld [vmem:[#allocation8 + $0x2a0] ss:$16 sps:$4 sm:$0xff]  }
 0x1d9   : > { %3852 = vmatpush1.bf16.msra.mxu0 %v5079_v23  ;;  %4024 = vmatpush1.bf16.msra.mxu1 %v5082_v24  ;;  %v5118_v23 = vld [vmem:[#allocation8 + $0x2a8] ss:$16 sps:$4 sm:$0xff]   ;;  %v5123_v24 = vld [vmem:[#allocation8 + $0x2c4] ss:$16 sps:$4 sm:$0xff]  }
 0x1da   : > { %3864 = vmatprep.subr.bf16.mxu0 %v5087_v26  ;;  %4036 = vmatprep.subr.bf16.mxu1 %v5090_v27  ;;  %v5126_v26 = vld [vmem:[#allocation8 + $0x2cc] ss:$16 sps:$4 sm:$0xff]   ;;  %v5121_v27 = vld [vmem:[#allocation8 + $0x2c0] ss:$16 sps:$4 sm:$0xff]  }
 0x1ef   : > { %v1972_v40 = vpop.f32.mrb[0].mxu0  ;;  %v2058_v28 = vpop.f32.mrb[0].mxu1 }
 0x1f0   : > { %v4847_v41 = vadd.f32 %v1972_v40, %v578_v36  ;;  %v1974_v42 = vpop.f32.mrb[1].mxu0  ;;  %v4851_v43 = vadd.f32 %v2058_v28, %v586_v37  ;;  %v2060_v45 = vpop.f32.mrb[1].mxu1  ;;  %v5135_v40 = vld [vmem:[#allocation8 + $0x304] ss:$16 sps:$4 sm:$0xff]   ;;  %v5133_v28 = vld [vmem:[#allocation8 + $0x300] ss:$16 sps:$4 sm:$0xff]  }
 0x1f1   : > { %v4848_v44 = vadd.f32 %v1974_v42, %v582_v38  ;;  %v1976_v46 = vpop.f32.mrb[2].mxu0  ;;  %v4852_v47 = vadd.f32 %v2060_v45, %v590_v39  ;;  %v2062_v49 = vpop.f32.mrb[2].mxu1  ;;  %v5136_v42 = vld [vmem:[#allocation8 + $0x308] ss:$16 sps:$4 sm:$0xff]   ;;  %v5139_v45 = vld [vmem:[#allocation8 + $0x320] ss:$16 sps:$4 sm:$0xff]  }
 0x1f2   : > { %v4849_v48 = vadd.f32 %v1976_v46, %v578_v36  ;;  %v1978_v50 = vpop.f32.mrb[3].mxu0  ;;  %v4853_v51 = vadd.f32 %v2062_v49, %v586_v37  ;;  %v2064_v52 = vpop.f32.mrb[3].mxu1  ;;  %v2239_v53 = vmax.f32 %v4847_v41, 0.0  ;;  %v2241_v56 = vmax.f32 %v4851_v43, 0.0  ;;  %v5129_v36 = vld [vmem:[#allocation8 + $0x2e4] ss:$16 sps:$4 sm:$0xff]  }
 0x1f3   : > { %v4850_v15 = vadd.f32 %v1978_v50, %v582_v38  ;;  %v4854_v55 = vadd.f32 %v2064_v52, %v590_v39  ;;  %v2240_v58 = vmax.f32 %v4848_v44, 0.0  ;;  %v2242_v60 = vmax.f32 %v4852_v47, 0.0  ;;  %v5132_v37 = vld [vmem:[#allocation8 + $0x2ec] ss:$16 sps:$4 sm:$0xff]   ;;  %v5127_v38 = vld [vmem:[#allocation8 + $0x2e0] ss:$16 sps:$4 sm:$0xff]  }
 0x1f4   : > { %v2247_v54 = vmax.f32 %v4849_v48, 0.0  ;;  %v2249_v57 = vmax.f32 %v4853_v51, 0.0  ;;  %v5130_v39 = vld [vmem:[#allocation8 + $0x2e8] ss:$16 sps:$4 sm:$0xff]   ;;  %v5138_v41 = vld [vmem:[#allocation8 + $0x30c] ss:$16 sps:$4 sm:$0xff]  }
 0x1f5   : > { %v2248_v59 = vmax.f32 %v4850_v15, 0.0  ;;  %v2250_v61 = vmax.f32 %v4854_v55, 0.0  ;;  %v5141_v43 = vld [vmem:[#allocation8 + $0x324] ss:$16 sps:$4 sm:$0xff]   ;;  %v5144_v44 = vld [vmem:[#allocation8 + $0x32c] ss:$16 sps:$4 sm:$0xff]  }
 0x1f6   : > { %v2255_v25 = vpack.c.bf16 %v2247_v54, %v2239_v53  ;;  %v5863_v62 = vpack.c.bf16 %v2249_v57, %v2241_v56  ;;  %v5142_v46 = vld [vmem:[#allocation8 + $0x328] ss:$16 sps:$4 sm:$0xff]   ;;  %v5147_v47 = vld [vmem:[#allocation8 + $0x344] ss:$16 sps:$4 sm:$0xff]   ;;  %v5150_v48 = vld [vmem:[#allocation8 + $0x34c] ss:$16 sps:$4 sm:$0xff]  }
 0x1f7   : > { %v2256_v63 = vpack.c.bf16 %v2248_v59, %v2240_v58  ;;  %v2258_v2 = vpack.c.bf16 %v2250_v61, %v2242_v60  ;;  %v5145_v49 = vld [vmem:[#allocation8 + $0x340] ss:$16 sps:$4 sm:$0xff]   ;;  %v5148_v50 = vld [vmem:[#allocation8 + $0x348] ss:$16 sps:$4 sm:$0xff]   ;;  %v5153_v51 = vld [vmem:[#allocation8 + $0x364] ss:$16 sps:$4 sm:$0xff]  }
 0x1f8   : > { %v5156_v15 = vld [vmem:[#allocation8 + $0x36c] ss:$16 sps:$4 sm:$0xff]   ;;  %v5151_v52 = vld [vmem:[#allocation8 + $0x360] ss:$16 sps:$4 sm:$0xff]   ;;  %v5154_v53 = vld [vmem:[#allocation8 + $0x368] ss:$16 sps:$4 sm:$0xff]  }
 0x1f9   : > { %3853 = vmatprep.mubr.bf16.mxu0 %v2256_v63  ;;  %4025 = vmatprep.mubr.bf16.mxu1 %v2256_v63  ;;  %v5159_v54 = vld [vmem:[#allocation8 + $0x384] ss:$16 sps:$4 sm:$0xff]   ;;  %v5162_v55 = vld [vmem:[#allocation8 + $0x38c] ss:$16 sps:$4 sm:$0xff]   ;;  %v5157_v56 = vld [vmem:[#allocation8 + $0x380] ss:$16 sps:$4 sm:$0xff]  }
 0x1fa   : > { %3854 = vmatmul.mubr.bf16.vlgmr.msra.gmra.mrb[8].mxu0 %v2255_v25  ;;  %4026 = vmatmul.mubr.bf16.vlgmr.msra.gmra.mrb[8].mxu1 %v2255_v25  ;;  %v5160_v58 = vld [vmem:[#allocation8 + $0x388] ss:$16 sps:$4 sm:$0xff]   ;;  %v5165_v57 = vld [vmem:[#allocation8 + $0x3a4] ss:$16 sps:$4 sm:$0xff]   ;;  %v5168_v59 = vld [vmem:[#allocation8 + $0x3ac] ss:$16 sps:$4 sm:$0xff]  }
 0x1fb   : > { %3865 = vmatpush1.bf16.msra.mxu0 %v5085_v0  ;;  %4037 = vmatpush1.bf16.msra.mxu1 %v5088_v1  ;;  %v5163_v60 = vld [vmem:[#allocation8 + $0x3a0] ss:$16 sps:$4 sm:$0xff]   ;;  %v5166_v25 = vld [vmem:[#allocation8 + $0x3a8] ss:$16 sps:$4 sm:$0xff]   ;;  %v5171_v61 = vld [vmem:[#allocation8 + $0x3c4] ss:$16 sps:$4 sm:$0xff]  }
 0x1fc   : > { %3896 = vmatprep.mubr.bf16.mxu0 %v2258_v2  ;;  %4068 = vmatprep.mubr.bf16.mxu1 %v2258_v2  ;;  %v5174_v63 = vld [vmem:[#allocation8 + $0x3cc] ss:$16 sps:$4 sm:$0xff]   ;;  %v5169_v0 = vld [vmem:[#allocation8 + $0x3c0] ss:$16 sps:$4 sm:$0xff]   ;;  %v5172_v1 = vld [vmem:[#allocation8 + $0x3c8] ss:$16 sps:$4 sm:$0xff]  }
 0x1fd   : > { %3866 = vmatprep.subr.bf16.mxu0 %v5093_v3  ;;  %4038 = vmatprep.subr.bf16.mxu1 %v5096_v4  ;;  %v5177_v2 = vld [vmem:[#allocation8 + $0x3e4] ss:$16 sps:$4 sm:$0xff]   ;;  %v5180_v3 = vld [vmem:[#allocation8 + $0x3ec] ss:$16 sps:$4 sm:$0xff]   ;;  %v5175_v4 = vld [vmem:[#allocation8 + $0x3e0] ss:$16 sps:$4 sm:$0xff]  }
 0x1ff   : > { %3867 = vmatpush1.bf16.msra.mxu0 %v5091_v5  ;;  %4039 = vmatpush1.bf16.msra.mxu1 %v5094_v6  ;;  %v5178_v5 = vld [vmem:[#allocation8 + $0x3e8] ss:$16 sps:$4 sm:$0xff]   ;;  %v5183_v6 = vld [vmem:[#allocation8 + $0x404] ss:$16 sps:$4 sm:$0xff]  }
 0x200   : > { %3868 = vmatprep.subr.bf16.mxu0 %v5099_v7  ;;  %4040 = vmatprep.subr.bf16.mxu1 %v5102_v8  ;;  %v5186_v7 = vld [vmem:[#allocation8 + $0x40c] ss:$16 sps:$4 sm:$0xff]   ;;  %v5181_v8 = vld [vmem:[#allocation8 + $0x400] ss:$16 sps:$4 sm:$0xff]  }
 0x203   : > { %3869 = vmatpush1.bf16.msra.mxu0 %v5097_v9  ;;  %4041 = vmatpush1.bf16.msra.mxu1 %v5100_v10  ;;  %v5184_v9 = vld [vmem:[#allocation8 + $0x408] ss:$16 sps:$4 sm:$0xff]   ;;  %v5189_v10 = vld [vmem:[#allocation8 + $0x424] ss:$16 sps:$4 sm:$0xff]  }
 0x204   : > { %3870 = vmatprep.subr.bf16.mxu0 %v5105_v11  ;;  %4042 = vmatprep.subr.bf16.mxu1 %v5108_v12  ;;  %v5192_v11 = vld [vmem:[#allocation8 + $0x42c] ss:$16 sps:$4 sm:$0xff]   ;;  %v5187_v12 = vld [vmem:[#allocation8 + $0x420] ss:$16 sps:$4 sm:$0xff]  }
 0x207   : > { %3871 = vmatpush1.bf16.msra.mxu0 %v5103_v13  ;;  %4043 = vmatpush1.bf16.msra.mxu1 %v5106_v14  ;;  %v5190_v13 = vld [vmem:[#allocation8 + $0x428] ss:$16 sps:$4 sm:$0xff]   ;;  %v5195_v14 = vld [vmem:[#allocation8 + $0x444] ss:$16 sps:$4 sm:$0xff]  }
 0x208   : > { %3872 = vmatprep.subr.bf16.mxu0 %v5111_v16  ;;  %4044 = vmatprep.subr.bf16.mxu1 %v5114_v17  ;;  %v5198_v16 = vld [vmem:[#allocation8 + $0x44c] ss:$16 sps:$4 sm:$0xff]   ;;  %v5193_v17 = vld [vmem:[#allocation8 + $0x440] ss:$16 sps:$4 sm:$0xff]  }
 0x20b   : > { %3873 = vmatpush1.bf16.msra.mxu0 %v5109_v18  ;;  %4045 = vmatpush1.bf16.msra.mxu1 %v5112_v19  ;;  %v5196_v18 = vld [vmem:[#allocation8 + $0x448] ss:$16 sps:$4 sm:$0xff]   ;;  %v5201_v19 = vld [vmem:[#allocation8 + $0x464] ss:$16 sps:$4 sm:$0xff]  }
 0x20c   : > { %3874 = vmatprep.subr.bf16.mxu0 %v5117_v20  ;;  %4046 = vmatprep.subr.bf16.mxu1 %v5120_v21  ;;  %v5204_v20 = vld [vmem:[#allocation8 + $0x46c] ss:$16 sps:$4 sm:$0xff]   ;;  %v5199_v21 = vld [vmem:[#allocation8 + $0x460] ss:$16 sps:$4 sm:$0xff]  }
 0x20f   : > { %3875 = vmatpush1.bf16.msra.mxu0 %v5115_v22  ;;  %4047 = vmatpush1.bf16.msra.mxu1 %v5118_v23  ;;  %v5207_v22 = vld [vmem:[#allocation8 + $0x484] ss:$16 sps:$4 sm:$0xff]   ;;  %v5210_v23 = vld [vmem:[#allocation8 + $0x48c] ss:$16 sps:$4 sm:$0xff]  }
 0x210   : > { %3876 = vmatprep.subr.bf16.mxu0 %v5123_v24  ;;  %4048 = vmatprep.subr.bf16.mxu1 %v5126_v26  ;;  %v5205_v24 = vld [vmem:[#allocation8 + $0x480] ss:$16 sps:$4 sm:$0xff]   ;;  %v5208_v26 = vld [vmem:[#allocation8 + $0x488] ss:$16 sps:$4 sm:$0xff]  }
 0x213   : > { %3877 = vmatpush1.bf16.msra.mxu0 %v5121_v27  ;;  %4049 = vmatpush1.bf16.msra.mxu1 %v5124_v29  ;;  %v5213_v27 = vld [vmem:[#allocation8 + $0x4a4] ss:$16 sps:$4 sm:$0xff]   ;;  %v5216_v29 = vld [vmem:[#allocation8 + $0x4ac] ss:$16 sps:$4 sm:$0xff]  }
 0x214   : > { %3878 = vmatprep.subr.bf16.mxu0 %v5129_v36  ;;  %4050 = vmatprep.subr.bf16.mxu1 %v5132_v37  ;;  %v5211_v36 = vld [vmem:[#allocation8 + $0x4a0] ss:$16 sps:$4 sm:$0xff]   ;;  %v5214_v37 = vld [vmem:[#allocation8 + $0x4a8] ss:$16 sps:$4 sm:$0xff]  }
 0x217   : > { %3879 = vmatpush1.bf16.msra.mxu0 %v5127_v38  ;;  %4051 = vmatpush1.bf16.msra.mxu1 %v5130_v39  ;;  %v5219_v38 = vld [vmem:[#allocation8 + $0x4c4] ss:$16 sps:$4 sm:$0xff]   ;;  %v5222_v39 = vld [vmem:[#allocation8 + $0x4cc] ss:$16 sps:$4 sm:$0xff]  }
 0x218   : > { %3880 = vmatprep.subr.bf16.mxu0 %v5135_v40  ;;  %4052 = vmatprep.subr.bf16.mxu1 %v5138_v41  ;;  %v5217_v40 = vld [vmem:[#allocation8 + $0x4c0] ss:$16 sps:$4 sm:$0xff]   ;;  %v5220_v41 = vld [vmem:[#allocation8 + $0x4c8] ss:$16 sps:$4 sm:$0xff]  }
 0x21b   : > { %3881 = vmatpush1.bf16.msra.mxu0 %v5133_v28  ;;  %4053 = vmatpush1.bf16.msra.mxu1 %v5136_v42  ;;  %v5225_v28 = vld [vmem:[#allocation8 + $0x4e4] ss:$16 sps:$4 sm:$0xff]   ;;  %v5228_v42 = vld [vmem:[#allocation8 + $0x4ec] ss:$16 sps:$4 sm:$0xff]  }
 0x21c   : > { %3882 = vmatprep.subr.bf16.mxu0 %v5141_v43  ;;  %4054 = vmatprep.subr.bf16.mxu1 %v5144_v44  ;;  %v5223_v43 = vld [vmem:[#allocation8 + $0x4e0] ss:$16 sps:$4 sm:$0xff]   ;;  %v5226_v44 = vld [vmem:[#allocation8 + $0x4e8] ss:$16 sps:$4 sm:$0xff]  }
 0x21f   : > { %3883 = vmatpush1.bf16.msra.mxu0 %v5139_v45  ;;  %4055 = vmatpush1.bf16.msra.mxu1 %v5142_v46  ;;  %v5231_v45 = vld [vmem:[#allocation8 + $0x504] ss:$16 sps:$4 sm:$0xff]   ;;  %v5234_v46 = vld [vmem:[#allocation8 + $0x50c] ss:$16 sps:$4 sm:$0xff]  }
 0x220   : > { %3884 = vmatprep.subr.bf16.mxu0 %v5147_v47  ;;  %4056 = vmatprep.subr.bf16.mxu1 %v5150_v48  ;;  %v5229_v47 = vld [vmem:[#allocation8 + $0x500] ss:$16 sps:$4 sm:$0xff]   ;;  %v5232_v48 = vld [vmem:[#allocation8 + $0x508] ss:$16 sps:$4 sm:$0xff]  }
 0x223   : > { %3885 = vmatpush1.bf16.msra.mxu0 %v5145_v49  ;;  %4057 = vmatpush1.bf16.msra.mxu1 %v5148_v50  ;;  %v5237_v49 = vld [vmem:[#allocation8 + $0x524] ss:$16 sps:$4 sm:$0xff]   ;;  %v5240_v50 = vld [vmem:[#allocation8 + $0x52c] ss:$16 sps:$4 sm:$0xff]  }
 0x224   : > { %3886 = vmatprep.subr.bf16.mxu0 %v5153_v51  ;;  %4058 = vmatprep.subr.bf16.mxu1 %v5156_v15  ;;  %v5235_v51 = vld [vmem:[#allocation8 + $0x520] ss:$16 sps:$4 sm:$0xff]   ;;  %v5238_v15 = vld [vmem:[#allocation8 + $0x528] ss:$16 sps:$4 sm:$0xff]  }
 0x227   : > { %3887 = vmatpush1.bf16.msra.mxu0 %v5151_v52  ;;  %4059 = vmatpush1.bf16.msra.mxu1 %v5154_v53  ;;  %v5243_v52 = vld [vmem:[#allocation8 + $0x544] ss:$16 sps:$4 sm:$0xff]   ;;  %v5246_v53 = vld [vmem:[#allocation8 + $0x54c] ss:$16 sps:$4 sm:$0xff]  }
 0x228   : > { %3888 = vmatprep.subr.bf16.mxu0 %v5159_v54  ;;  %4060 = vmatprep.subr.bf16.mxu1 %v5162_v55  ;;  %v5241_v54 = vld [vmem:[#allocation8 + $0x540] ss:$16 sps:$4 sm:$0xff]   ;;  %v5244_v55 = vld [vmem:[#allocation8 + $0x548] ss:$16 sps:$4 sm:$0xff]  }
 0x22b   : > { %3889 = vmatpush1.bf16.msra.mxu0 %v5157_v56  ;;  %4061 = vmatpush1.bf16.msra.mxu1 %v5160_v58  ;;  %v5249_v56 = vld [vmem:[#allocation8 + $0x564] ss:$16 sps:$4 sm:$0xff]   ;;  %v5252_v58 = vld [vmem:[#allocation8 + $0x56c] ss:$16 sps:$4 sm:$0xff]  }
 0x22c   : > { %3890 = vmatprep.subr.bf16.mxu0 %v5165_v57  ;;  %4062 = vmatprep.subr.bf16.mxu1 %v5168_v59  ;;  %v5247_v57 = vld [vmem:[#allocation8 + $0x560] ss:$16 sps:$4 sm:$0xff]   ;;  %v5250_v59 = vld [vmem:[#allocation8 + $0x568] ss:$16 sps:$4 sm:$0xff]  }
 0x22f   : > { %3891 = vmatpush1.bf16.msra.mxu0 %v5163_v60  ;;  %4063 = vmatpush1.bf16.msra.mxu1 %v5166_v25  ;;  %v5255_v60 = vld [vmem:[#allocation8 + $0x584] ss:$16 sps:$4 sm:$0xff]   ;;  %v5258_v25 = vld [vmem:[#allocation8 + $0x58c] ss:$16 sps:$4 sm:$0xff]  }
 0x230   : > { %3892 = vmatprep.subr.bf16.mxu0 %v5171_v61  ;;  %4064 = vmatprep.subr.bf16.mxu1 %v5174_v63  ;;  %v5253_v61 = vld [vmem:[#allocation8 + $0x580] ss:$16 sps:$4 sm:$0xff]   ;;  %v5256_v63 = vld [vmem:[#allocation8 + $0x588] ss:$16 sps:$4 sm:$0xff]  }
 0x233   : > { %3893 = vmatpush1.bf16.msra.mxu0 %v5169_v0  ;;  %4065 = vmatpush1.bf16.msra.mxu1 %v5172_v1  ;;  %v5261_v0 = vld [vmem:[#allocation8 + $0x5a4] ss:$16 sps:$4 sm:$0xff]   ;;  %v5264_v1 = vld [vmem:[#allocation8 + $0x5ac] ss:$16 sps:$4 sm:$0xff]  }
 0x234   : > { %3894 = vmatprep.subr.bf16.mxu0 %v5177_v2  ;;  %4066 = vmatprep.subr.bf16.mxu1 %v5180_v3  ;;  %v593_v2 = vsub.s32 4, %v5843_v30  ;;  %v601_v3 = vsub.s32 6, %v5843_v30 }
 0x237   : > { %3895 = vmatpush1.bf16.msra.mxu0 %v5175_v4  ;;  %4067 = vmatpush1.bf16.msra.mxu1 %v5178_v5  ;;  %v597_v4 = vsub.s32 5, %v5843_v30  ;;  %v605_v5 = vsub.s32 7, %v5843_v30 }
 0x238   : > { %3907 = vmatprep.subr.bf16.mxu0 %v5183_v6  ;;  %4079 = vmatprep.subr.bf16.mxu1 %v5186_v7  ;;  %v5259_v6 = vld [vmem:[#allocation8 + $0x5a0] ss:$16 sps:$4 sm:$0xff]   ;;  %v5262_v7 = vld [vmem:[#allocation8 + $0x5a8] ss:$16 sps:$4 sm:$0xff]  }
 0x23a   : > { %3897 = vmatmul.mubr.bf16.vlgmr.msra.gmra.mrb[8].mxu0 %v5863_v62  ;;  %4069 = vmatmul.mubr.bf16.vlgmr.msra.gmra.mrb[8].mxu1 %v5863_v62  ;;  %v5202_v62 = vld [vmem:[#allocation8 + $0x468] ss:$16 sps:$4 sm:$0xff]  }
 0x23b   : > { %3908 = vmatpush1.bf16.msra.mxu0 %v5181_v8  ;;  %4080 = vmatpush1.bf16.msra.mxu1 %v5184_v9  ;;  %v594_v8 = vrot.slane %v5846_v32, %v593_v2  ;;  %v5267_v9 = vld [vmem:[#allocation8 + $0x5c4] ss:$16 sps:$4 sm:$0xff]   ;;  %v5300_v2 = vld [vmem:[#allocation8 + $0x66c] ss:$16 sps:$4 sm:$0xff]  }
 0x23c   : > { %3909 = vmatprep.subr.bf16.mxu0 %v5189_v10  ;;  %4081 = vmatprep.subr.bf16.mxu1 %v5192_v11  ;;  %v5270_v10 = vld [vmem:[#allocation8 + $0x5cc] ss:$16 sps:$4 sm:$0xff]   ;;  %v602_v11 = vrot.slane %v5846_v32, %v601_v3  ;;  %v5295_v3 = vld [vmem:[#allocation8 + $0x660] ss:$16 sps:$4 sm:$0xff]  }
 0x23f   : > { %3910 = vmatpush1.bf16.msra.mxu0 %v5187_v12  ;;  %4082 = vmatpush1.bf16.msra.mxu1 %v5190_v13  ;;  %v598_v12 = vrot.slane %v5846_v32, %v597_v4  ;;  %v606_v13 = vrot.slane %v5846_v32, %v605_v5  ;;  %v5298_v4 = vld [vmem:[#allocation8 + $0x668] ss:$16 sps:$4 sm:$0xff]   ;;  %v5303_v5 = vld [vmem:[#allocation8 + $0x684] ss:$16 sps:$4 sm:$0xff]  }
 0x240   : > { %3911 = vmatprep.subr.bf16.mxu0 %v5195_v14  ;;  %4083 = vmatprep.subr.bf16.mxu1 %v5198_v16  ;;  %v5265_v16 = vld [vmem:[#allocation8 + $0x5c0] ss:$16 sps:$4 sm:$0xff]  }
 0x243   : > { %3912 = vmatpush1.bf16.msra.mxu0 %v5193_v17  ;;  %4084 = vmatpush1.bf16.msra.mxu1 %v5196_v18  ;;  %v5268_v17 = vld [vmem:[#allocation8 + $0x5c8] ss:$16 sps:$4 sm:$0xff]  }
 0x244   : > { %3913 = vmatprep.subr.bf16.mxu0 %v5201_v19  ;;  %4085 = vmatprep.subr.bf16.mxu1 %v5204_v20 }
 0x247   : > { %3914 = vmatpush1.bf16.msra.mxu0 %v5199_v21  ;;  %4086 = vmatpush1.bf16.msra.mxu1 %v5202_v62  ;;  %v5273_v21 = vld [vmem:[#allocation8 + $0x5e4] ss:$16 sps:$4 sm:$0xff]   ;;  %v5276_v62 = vld [vmem:[#allocation8 + $0x5ec] ss:$16 sps:$4 sm:$0xff]  }
 0x248   : > { %3915 = vmatprep.subr.bf16.mxu0 %v5207_v22  ;;  %4087 = vmatprep.subr.bf16.mxu1 %v5210_v23 }
 0x24b   : > { %3916 = vmatpush1.bf16.msra.mxu0 %v5205_v24  ;;  %4088 = vmatpush1.bf16.msra.mxu1 %v5208_v26 }
 0x24c   : > { %3917 = vmatprep.subr.bf16.mxu0 %v5213_v27  ;;  %4089 = vmatprep.subr.bf16.mxu1 %v5216_v29 }
 0x24f   : > { %3918 = vmatpush1.bf16.msra.mxu0 %v5211_v36  ;;  %4090 = vmatpush1.bf16.msra.mxu1 %v5214_v37 }
 0x250   : > { %3919 = vmatprep.subr.bf16.mxu0 %v5219_v38  ;;  %4091 = vmatprep.subr.bf16.mxu1 %v5222_v39 }
 0x253   : > { %3920 = vmatpush1.bf16.msra.mxu0 %v5217_v40  ;;  %4092 = vmatpush1.bf16.msra.mxu1 %v5220_v41  ;;  %v5271_v40 = vld [vmem:[#allocation8 + $0x5e0] ss:$16 sps:$4 sm:$0xff]   ;;  %v5274_v41 = vld [vmem:[#allocation8 + $0x5e8] ss:$16 sps:$4 sm:$0xff]  }
 0x254   : > { %3921 = vmatprep.subr.bf16.mxu0 %v5225_v28  ;;  %4093 = vmatprep.subr.bf16.mxu1 %v5228_v42 }
 0x257   : > { %3922 = vmatpush1.bf16.msra.mxu0 %v5223_v43  ;;  %4094 = vmatpush1.bf16.msra.mxu1 %v5226_v44  ;;  %v5279_v44 = vld [vmem:[#allocation8 + $0x604] ss:$16 sps:$4 sm:$0xff]  }
 0x258   : > { %3923 = vmatprep.subr.bf16.mxu0 %v5231_v45  ;;  %4095 = vmatprep.subr.bf16.mxu1 %v5234_v46  ;;  %v5282_v45 = vld [vmem:[#allocation8 + $0x60c] ss:$16 sps:$4 sm:$0xff]  }
 0x25b   : > { %3924 = vmatpush1.bf16.msra.mxu0 %v5229_v47  ;;  %4096 = vmatpush1.bf16.msra.mxu1 %v5232_v48 }
 0x25c   : > { %3925 = vmatprep.subr.bf16.mxu0 %v5237_v49  ;;  %4097 = vmatprep.subr.bf16.mxu1 %v5240_v50 }
 0x25f   : > { %3926 = vmatpush1.bf16.msra.mxu0 %v5235_v51  ;;  %4098 = vmatpush1.bf16.msra.mxu1 %v5238_v15 }
 0x260   : > { %3927 = vmatprep.subr.bf16.mxu0 %v5243_v52  ;;  %4099 = vmatprep.subr.bf16.mxu1 %v5246_v53 }
 0x263   : > { %3928 = vmatpush1.bf16.msra.mxu0 %v5241_v54  ;;  %4100 = vmatpush1.bf16.msra.mxu1 %v5244_v55  ;;  %v5277_v54 = vld [vmem:[#allocation8 + $0x600] ss:$16 sps:$4 sm:$0xff]   ;;  %v5280_v55 = vld [vmem:[#allocation8 + $0x608] ss:$16 sps:$4 sm:$0xff]  }
 0x264   : > { %3929 = vmatprep.subr.bf16.mxu0 %v5249_v56  ;;  %4101 = vmatprep.subr.bf16.mxu1 %v5252_v58  ;;  %v5285_v58 = vld [vmem:[#allocation8 + $0x624] ss:$16 sps:$4 sm:$0xff]  }
 0x267   : > { %3930 = vmatpush1.bf16.msra.mxu0 %v5247_v57  ;;  %4102 = vmatpush1.bf16.msra.mxu1 %v5250_v59  ;;  %v5288_v57 = vld [vmem:[#allocation8 + $0x62c] ss:$16 sps:$4 sm:$0xff]   ;;  %v5283_v59 = vld [vmem:[#allocation8 + $0x620] ss:$16 sps:$4 sm:$0xff]  }
 0x268   : > { %3931 = vmatprep.subr.bf16.mxu0 %v5255_v60  ;;  %4103 = vmatprep.subr.bf16.mxu1 %v5258_v25  ;;  %v5286_v60 = vld [vmem:[#allocation8 + $0x628] ss:$16 sps:$4 sm:$0xff]   ;;  %v5291_v25 = vld [vmem:[#allocation8 + $0x644] ss:$16 sps:$4 sm:$0xff]  }
 0x26b   : > { %3932 = vmatpush1.bf16.msra.mxu0 %v5253_v61  ;;  %4104 = vmatpush1.bf16.msra.mxu1 %v5256_v63  ;;  %v5294_v61 = vld [vmem:[#allocation8 + $0x64c] ss:$16 sps:$4 sm:$0xff]   ;;  %v5289_v63 = vld [vmem:[#allocation8 + $0x640] ss:$16 sps:$4 sm:$0xff]  }
 0x26c   : > { %3933 = vmatprep.subr.bf16.mxu0 %v5261_v0  ;;  %4105 = vmatprep.subr.bf16.mxu1 %v5264_v1  ;;  %v5292_v0 = vld [vmem:[#allocation8 + $0x648] ss:$16 sps:$4 sm:$0xff]   ;;  %v5297_v1 = vld [vmem:[#allocation8 + $0x664] ss:$16 sps:$4 sm:$0xff]  }
 0x26f   : > { %3934 = vmatpush1.bf16.msra.mxu0 %v5259_v6  ;;  %4106 = vmatpush1.bf16.msra.mxu1 %v5262_v7  ;;  %v2144_v14 = vpop.f32.mrb[4].mxu0  ;;  %v2230_v19 = vpop.f32.mrb[4].mxu1  ;;  %v5306_v6 = vld [vmem:[#allocation8 + $0x68c] ss:$16 sps:$4 sm:$0xff]   ;;  %v5301_v7 = vld [vmem:[#allocation8 + $0x680] ss:$16 sps:$4 sm:$0xff]  }
 0x270   : > { %v4855_v18 = vadd.f32 %v2144_v14, %v594_v8  ;;  %v2146_v20 = vpop.f32.mrb[5].mxu0  ;;  %3935 = vmatprep.subr.bf16.mxu0 %v5267_v9  ;;  %4107 = vmatprep.subr.bf16.mxu1 %v5270_v10  ;;  %v4859_v22 = vadd.f32 %v2230_v19, %v602_v11  ;;  %v2232_v24 = vpop.f32.mrb[5].mxu1  ;;  %v5309_v9 = vld [vmem:[#allocation8 + $0x6a4] ss:$16 sps:$4 sm:$0xff]   ;;  %v5312_v10 = vld [vmem:[#allocation8 + $0x6ac] ss:$16 sps:$4 sm:$0xff]  }
 0x271   : > { %v4856_v23 = vadd.f32 %v2146_v20, %v598_v12  ;;  %v2148_v26 = vpop.f32.mrb[6].mxu0  ;;  %v4860_v27 = vadd.f32 %v2232_v24, %v606_v13  ;;  %v2234_v36 = vpop.f32.mrb[6].mxu1  ;;  %v5318_v14 = vld [vmem:[#allocation8 + $0x6cc] ss:$16 sps:$4 sm:$0xff]   ;;  %v5319_v20 = vld [vmem:[#allocation8 + $0x6e0] ss:$16 sps:$4 sm:$0xff]  }
 0x272   : > { %v4857_v29 = vadd.f32 %v2148_v26, %v594_v8  ;;  %v2150_v32 = vpop.f32.mrb[7].mxu0  ;;  %v4861_v37 = vadd.f32 %v2234_v36, %v602_v11  ;;  %v2236_v39 = vpop.f32.mrb[7].mxu1  ;;  %v2243_v28 = vmax.f32 %v4855_v18, 0.0  ;;  %v2245_v46 = vmax.f32 %v4859_v22, 0.0  ;;  %v5304_v8 = vld [vmem:[#allocation8 + $0x688] ss:$16 sps:$4 sm:$0xff]  }
 0x273   : > { %v4858_v38 = vadd.f32 %v2150_v32, %v598_v12  ;;  %3936 = vmatpush1.bf16.msra.mxu0 %v5265_v16  ;;  %4108 = vmatpush1.bf16.msra.mxu1 %v5268_v17  ;;  %v4862_v43 = vadd.f32 %v2236_v39, %v606_v13  ;;  %v2244_v47 = vmax.f32 %v4856_v23, 0.0  ;;  %v2246_v50 = vmax.f32 %v4860_v27, 0.0  ;;  %v5307_v11 = vld [vmem:[#allocation8 + $0x6a0] ss:$16 sps:$4 sm:$0xff]   ;;  %v5310_v12 = vld [vmem:[#allocation8 + $0x6a8] ss:$16 sps:$4 sm:$0xff]  }
 0x274   : > { %v2251_v42 = vmax.f32 %v4857_v29, 0.0  ;;  %3937 = vmatprep.subr.bf16.mxu0 %v5273_v21  ;;  %4109 = vmatprep.subr.bf16.mxu1 %v5276_v62  ;;  %v2253_v48 = vmax.f32 %v4861_v37, 0.0  ;;  %v5315_v13 = vld [vmem:[#allocation8 + $0x6c4] ss:$16 sps:$4 sm:$0xff]   ;;  %v5313_v16 = vld [vmem:[#allocation8 + $0x6c0] ss:$16 sps:$4 sm:$0xff]  }
 0x275   : > { %v2252_v49 = vmax.f32 %v4858_v38, 0.0  ;;  %v2254_v15 = vmax.f32 %v4862_v43, 0.0  ;;  %v5316_v17 = vld [vmem:[#allocation8 + $0x6c8] ss:$16 sps:$4 sm:$0xff]   ;;  %v5321_v18 = vld [vmem:[#allocation8 + $0x6e4] ss:$16 sps:$4 sm:$0xff]  }
 0x276   : > { %v2259_v51 = vpack.c.bf16 %v2251_v42, %v2243_v28  ;;  %v5875_v52 = vpack.c.bf16 %v2253_v48, %v2245_v46  ;;  %v5324_v19 = vld [vmem:[#allocation8 + $0x6ec] ss:$16 sps:$4 sm:$0xff]   ;;  %v5322_v21 = vld [vmem:[#allocation8 + $0x6e8] ss:$16 sps:$4 sm:$0xff]   ;;  %v5327_v62 = vld [vmem:[#allocation8 + $0x704] ss:$16 sps:$4 sm:$0xff]  }
 0x277   : > { %v2260_v53 = vpack.c.bf16 %v2252_v49, %v2244_v47  ;;  %3938 = vmatpush1.bf16.msra.mxu0 %v5271_v40  ;;  %4110 = vmatpush1.bf16.msra.mxu1 %v5274_v41  ;;  %v2262_v56 = vpack.c.bf16 %v2254_v15, %v2246_v50  ;;  %v5330_v22 = vld [vmem:[#allocation8 + $0x70c] ss:$16 sps:$4 sm:$0xff]   ;;  %v5325_v23 = vld [vmem:[#allocation8 + $0x700] ss:$16 sps:$4 sm:$0xff]   ;;  %v5328_v24 = vld [vmem:[#allocation8 + $0x708] ss:$16 sps:$4 sm:$0xff]  }
 0x278   : > { %3950 = vmatprep.subr.bf16.mxu0 %v5279_v44  ;;  %4122 = vmatprep.subr.bf16.mxu1 %v5282_v45  ;;  %v5333_v26 = vld [vmem:[#allocation8 + $0x724] ss:$16 sps:$4 sm:$0xff]   ;;  %v5336_v27 = vld [vmem:[#allocation8 + $0x72c] ss:$16 sps:$4 sm:$0xff]   ;;  %v5331_v29 = vld [vmem:[#allocation8 + $0x720] ss:$16 sps:$4 sm:$0xff]  }
 0x279   : > { %3939 = vmatprep.mubr.bf16.mxu0 %v2260_v53  ;;  %4111 = vmatprep.mubr.bf16.mxu1 %v2260_v53  ;;  %v5334_v36 = vld [vmem:[#allocation8 + $0x728] ss:$16 sps:$4 sm:$0xff]   ;;  %v5339_v32 = vld [vmem:[#allocation8 + $0x744] ss:$16 sps:$4 sm:$0xff]   ;;  %v5342_v37 = vld [vmem:[#allocation8 + $0x74c] ss:$16 sps:$4 sm:$0xff]  }
 0x27a   : > { %3940 = vmatmul.mubr.bf16.vlgmr.msra.gmra.mrb[8].mxu0 %v2259_v51  ;;  %4112 = vmatmul.mubr.bf16.vlgmr.msra.gmra.mrb[8].mxu1 %v2259_v51  ;;  %v5337_v38 = vld [vmem:[#allocation8 + $0x740] ss:$16 sps:$4 sm:$0xff]   ;;  %v5340_v39 = vld [vmem:[#allocation8 + $0x748] ss:$16 sps:$4 sm:$0xff]   ;;  %v5345_v40 = vld [vmem:[#allocation8 + $0x764] ss:$16 sps:$4 sm:$0xff]  }
 0x27b   : > { %3951 = vmatpush1.bf16.msra.mxu0 %v5277_v54  ;;  %4123 = vmatpush1.bf16.msra.mxu1 %v5280_v55  ;;  %v5348_v41 = vld [vmem:[#allocation8 + $0x76c] ss:$16 sps:$4 sm:$0xff]   ;;  %v5343_v28 = vld [vmem:[#allocation8 + $0x760] ss:$16 sps:$4 sm:$0xff]   ;;  %v5346_v42 = vld [vmem:[#allocation8 + $0x768] ss:$16 sps:$4 sm:$0xff]  }
 0x27c   : > { %3982 = vmatprep.mubr.bf16.mxu0 %v2262_v56  ;;  %4154 = vmatprep.mubr.bf16.mxu1 %v2262_v56  ;;  %v5351_v43 = vld [vmem:[#allocation8 + $0x784] ss:$16 sps:$4 sm:$0xff]   ;;  %v5354_v44 = vld [vmem:[#allocation8 + $0x78c] ss:$16 sps:$4 sm:$0xff]   ;;  %v5349_v45 = vld [vmem:[#allocation8 + $0x780] ss:$16 sps:$4 sm:$0xff]  }
 0x27d   : > { %3952 = vmatprep.subr.bf16.mxu0 %v5285_v58  ;;  %4124 = vmatprep.subr.bf16.mxu1 %v5288_v57  ;;  %v5352_v46 = vld [vmem:[#allocation8 + $0x788] ss:$16 sps:$4 sm:$0xff]   ;;  %v5357_v47 = vld [vmem:[#allocation8 + $0x7a4] ss:$16 sps:$4 sm:$0xff]   ;;  %v5360_v48 = vld [vmem:[#allocation8 + $0x7ac] ss:$16 sps:$4 sm:$0xff]  }
 0x27e   : > { %v5355_v49 = vld [vmem:[#allocation8 + $0x7a0] ss:$16 sps:$4 sm:$0xff]   ;;  %v5358_v50 = vld [vmem:[#allocation8 + $0x7a8] ss:$16 sps:$4 sm:$0xff]   ;;  %v5363_v51 = vld [vmem:[#allocation8 + $0x7c4] ss:$16 sps:$4 sm:$0xff]  }
 0x27f   : > { %3953 = vmatpush1.bf16.msra.mxu0 %v5283_v59  ;;  %4125 = vmatpush1.bf16.msra.mxu1 %v5286_v60  ;;  %v5366_v15 = vld [vmem:[#allocation8 + $0x7cc] ss:$16 sps:$4 sm:$0xff]   ;;  %v5361_v53 = vld [vmem:[#allocation8 + $0x7c0] ss:$16 sps:$4 sm:$0xff]   ;;  %v5364_v54 = vld [vmem:[#allocation8 + $0x7c8] ss:$16 sps:$4 sm:$0xff]  }
 0x280   : > { %3954 = vmatprep.subr.bf16.mxu0 %v5291_v25  ;;  %4126 = vmatprep.subr.bf16.mxu1 %v5294_v61  ;;  %v5369_v55 = vld [vmem:[#allocation8 + $0x7e4] ss:$16 sps:$4 sm:$0xff]   ;;  %v5372_v56 = vld [vmem:[#allocation8 + $0x7ec] ss:$16 sps:$4 sm:$0xff]   ;;  %v5367_v58 = vld [vmem:[#allocation8 + $0x7e0] ss:$16 sps:$4 sm:$0xff]  }
 0x281   : > { %v5370_v57 = vld [vmem:[#allocation8 + $0x7e8] ss:$16 sps:$4 sm:$0xff]  }
 0x282   : > { %v2519_v59 = vld [vmem:[%s5957_s4] sm:$0xf] }
 0x283   : > { %3955 = vmatpush1.bf16.msra.mxu0 %v5289_v63  ;;  %4127 = vmatpush1.bf16.msra.mxu1 %v5292_v0  ;;  %v2524_v60 = vrot.slane %v2519_v59, %v577_v31  ;;  %v2532_v25 = vrot.slane %v2519_v59, %v585_v33  ;;  %v2528_v61 = vrot.slane %v2519_v59, %v581_v34 }
 0x284   : > { %3956 = vmatprep.subr.bf16.mxu0 %v5297_v1  ;;  %4128 = vmatprep.subr.bf16.mxu1 %v5300_v2  ;;  %v2536_v63 = vrot.slane %v2519_v59, %v589_v35 }
 0x287   : > { %3957 = vmatpush1.bf16.msra.mxu0 %v5295_v3  ;;  %4129 = vmatpush1.bf16.msra.mxu1 %v5298_v4 }
 0x288   : > { %3958 = vmatprep.subr.bf16.mxu0 %v5303_v5  ;;  %4130 = vmatprep.subr.bf16.mxu1 %v5306_v6 }
 0x28b   : > { %3959 = vmatpush1.bf16.msra.mxu0 %v5301_v7  ;;  %4131 = vmatpush1.bf16.msra.mxu1 %v5304_v8 }
 0x28c   : > { %3960 = vmatprep.subr.bf16.mxu0 %v5309_v9  ;;  %4132 = vmatprep.subr.bf16.mxu1 %v5312_v10 }
 0x28f   : > { %3961 = vmatpush1.bf16.msra.mxu0 %v5307_v11  ;;  %4133 = vmatpush1.bf16.msra.mxu1 %v5310_v12 }
 0x290   : > { %3962 = vmatprep.subr.bf16.mxu0 %v5315_v13  ;;  %4134 = vmatprep.subr.bf16.mxu1 %v5318_v14 }
 0x293   : > { %3963 = vmatpush1.bf16.msra.mxu0 %v5313_v16  ;;  %4135 = vmatpush1.bf16.msra.mxu1 %v5316_v17 }
 0x294   : > { %3964 = vmatprep.subr.bf16.mxu0 %v5321_v18  ;;  %4136 = vmatprep.subr.bf16.mxu1 %v5324_v19 }
 0x297   : > { %3965 = vmatpush1.bf16.msra.mxu0 %v5319_v20  ;;  %4137 = vmatpush1.bf16.msra.mxu1 %v5322_v21 }
 0x298   : > { %3966 = vmatprep.subr.bf16.mxu0 %v5327_v62  ;;  %4138 = vmatprep.subr.bf16.mxu1 %v5330_v22 }
 0x29b   : > { %3967 = vmatpush1.bf16.msra.mxu0 %v5325_v23  ;;  %4139 = vmatpush1.bf16.msra.mxu1 %v5328_v24 }
 0x29c   : > { %3968 = vmatprep.subr.bf16.mxu0 %v5333_v26  ;;  %4140 = vmatprep.subr.bf16.mxu1 %v5336_v27 }
 0x29f   : > { %3969 = vmatpush1.bf16.msra.mxu0 %v5331_v29  ;;  %4141 = vmatpush1.bf16.msra.mxu1 %v5334_v36 }
 0x2a0   : > { %3970 = vmatprep.subr.bf16.mxu0 %v5339_v32  ;;  %4142 = vmatprep.subr.bf16.mxu1 %v5342_v37 }
 0x2a3   : > { %3971 = vmatpush1.bf16.msra.mxu0 %v5337_v38  ;;  %4143 = vmatpush1.bf16.msra.mxu1 %v5340_v39 }
 0x2a4   : > { %3972 = vmatprep.subr.bf16.mxu0 %v5345_v40  ;;  %4144 = vmatprep.subr.bf16.mxu1 %v5348_v41 }
 0x2a7   : > { %3973 = vmatpush1.bf16.msra.mxu0 %v5343_v28  ;;  %4145 = vmatpush1.bf16.msra.mxu1 %v5346_v42 }
 0x2a8   : > { %3974 = vmatprep.subr.bf16.mxu0 %v5351_v43  ;;  %4146 = vmatprep.subr.bf16.mxu1 %v5354_v44 }
 0x2ab   : > { %3975 = vmatpush1.bf16.msra.mxu0 %v5349_v45  ;;  %4147 = vmatpush1.bf16.msra.mxu1 %v5352_v46 }
 0x2ac   : > { %3976 = vmatprep.subr.bf16.mxu0 %v5357_v47  ;;  %4148 = vmatprep.subr.bf16.mxu1 %v5360_v48 }
 0x2af   : > { %3977 = vmatpush1.bf16.msra.mxu0 %v5355_v49  ;;  %4149 = vmatpush1.bf16.msra.mxu1 %v5358_v50 }
 0x2b0   : > { %3978 = vmatprep.subr.bf16.mxu0 %v5363_v51  ;;  %4150 = vmatprep.subr.bf16.mxu1 %v5366_v15 }
 0x2b3   : > { %3979 = vmatpush1.bf16.msra.mxu0 %v5361_v53  ;;  %4151 = vmatpush1.bf16.msra.mxu1 %v5364_v54 }
 0x2b4   : > { %3980 = vmatprep.subr.bf16.mxu0 %v5369_v55  ;;  %4152 = vmatprep.subr.bf16.mxu1 %v5372_v56 }
 0x2b7   : > { %3981 = vmatpush1.bf16.msra.mxu0 %v5367_v58  ;;  %4153 = vmatpush1.bf16.msra.mxu1 %v5370_v57 }
 0x2ba   : > { %3983 = vmatmul.mubr.bf16.vlgmr.msra.gmra.mrb[8].mxu0 %v5875_v52  ;;  %4155 = vmatmul.mubr.bf16.vlgmr.msra.gmra.mrb[8].mxu1 %v5875_v52 }
 0x38d   : > { %v3984_v0 = vpop.f32.mrb[8].mxu0  ;;  %v4156_v1 = vpop.f32.mrb[8].mxu1  ;;  %4180 = sbr.rel (!%p5980_p10) target bundleno = 944 (0x3b0), region = 60 }
 0x38e   : > { %v4863_v52 = vadd.f32 %v3984_v0, %v2524_v60  ;;  %v4867_v2 = vadd.f32 %v4156_v1, %v2532_v25  ;;  %v3986_v3 = vpop.f32.mrb[9].mxu0  ;;  %v4158_v4 = vpop.f32.mrb[9].mxu1 }
 0x38f   : > { %v4864_v5 = vadd.f32 %v3986_v3, %v2528_v61  ;;  %v4868_v6 = vadd.f32 %v4158_v4, %v2536_v63  ;;  %v3988_v7 = vpop.f32.mrb[10].mxu0  ;;  %v4160_v8 = vpop.f32.mrb[10].mxu1 }
 0x390   : > { %4165 = vst [vmem:[%s292_s17] sm:$0xff] %v4863_v52  ;;  %4167 = vst [vmem:[%s292_s17 + $0x10] sm:$0xff] %v4867_v2  ;;  %v4865_v31 = vadd.f32 %v3988_v7, %v2524_v60  ;;  %v4869_v33 = vadd.f32 %v4160_v8, %v2532_v25  ;;  %v3990_v34 = vpop.f32.mrb[11].mxu0  ;;  %v4162_v30 = vpop.f32.mrb[11].mxu1 }
 0x391   : > { %4166 = vst [vmem:[%s292_s17 + $0x8] sm:$0xff] %v4864_v5  ;;  %4168 = vst [vmem:[%s292_s17 + $0x18] sm:$0xff] %v4868_v6  ;;  %v4866_v35 = vadd.f32 %v3990_v34, %v2528_v61  ;;  %v4870_v9 = vadd.f32 %v4162_v30, %v2536_v63 }
 0x392   : > { %4169 = vst [vmem:[%s292_s17 + $0x20] sm:$0xff] %v4865_v31  ;;  %4171 = vst [vmem:[%s292_s17 + $0x30] sm:$0xff] %v4869_v33 }
 0x393   : > { %4170 = vst [vmem:[%s292_s17 + $0x28] sm:$0xff] %v4866_v35  ;;  %4172 = vst [vmem:[%s292_s17 + $0x38] sm:$0xff] %v4870_v9 }
 0x394   : > { %s5990_s9 = smov (!%p4183_p1, %s4182_s9), 2 }
 0x395   : > { %s5896_s14 = sshll.u32 %s5990_s9, 9 }
 0x396   : > { %s4188_s15 = ssub.s32 1024, %s5896_s14 }
 0x397   : > { %4189 = vsyncadd %s4174_s25, %s4188_s15  ;;  %p4834_p4 = scmp.ne.s32.totalorder %s5896_s14, 0  ;;  %s4846_s16 = sshll.u32 %s5625_s22, 10 }
 0x398   : > { %s5906_s13 = scalar_lea.hbm %s5958_s5, %s4846_s16  ;;  %s4195_s28 = sshll.u32 %s292_s17, 4  ;;  %s5908_s28 = int_to_ptr.vmem [resolvable:$true] %s4195_s28 }
 0x399   : > { %s5485_s26 = scalar_lea.vmem %s5908_s28, %s5896_s14  ;;  %s5571_s8 = smov [#allocation10]  }
 0x39a   : > { %p5486_p6 = scmp.ne.s32.totalorder %s5908_s28, %s5485_s26  ;;  %s5489_s27 = sshll.u32 %s5571_s8, 4  ;;  %s5490_s27 = int_to_ptr.vmem [resolvable:$false] %s5489_s27 }
 0x39b   : > { %s5491_s22 = scalar_lea.vmem %s5490_s27, 2048  ;;  %p5492_p11 = scmp.lt.s32.totalorder %s5908_s28, %s5490_s27 }
 0x39c   : > { %p5487_p3 = pnand %p5486_p6, %p4834_p4  ;;  %p5493_p13 = scmp.lt.s32.totalorder %s5491_s22, %s5485_s26 }
 0x39e   : > { %p5488_p5 = pneg %p5487_p3  ;;  %p5494_p12 = por %p5493_p13, %p5492_p11 }
 0x3a0   : > { %p5495_p0 = pnand %p5494_p12, %p5488_p5 }
 0x3a2   : > { %5498 = shalt.err (!%p5495_p0)
}
 0x3a3   : > { %s5499_s11 = scalar_lea.hbm %s5906_s13, %s5896_s14  ;;  %s5503_s7 = scalar_lea.hbm %s5958_s5, 2560 }
 0x3a4   : > { %p5500_p2 = scmp.ne.s32.totalorder %s5906_s13, %s5499_s11  ;;  %p5504_p9 = scmp.lt.u32.totalorder %s5906_s13, %s5958_s5 }
 0x3a5   : > { %p5505_p10 = scmp.lt.u32.totalorder %s5503_s7, %s5499_s11  ;;  %p5507_p6 = scmp.lt.u32.totalorder %s5499_s11, %s5906_s13 }
 0x3a6   : > { %p5501_p7 = pnand %p5500_p2, %p4834_p4 }
 0x3a7   : > { %p5506_p1 = por %p5505_p10, %p5504_p9 }
 0x3a8   : > { %p5502_p8 = pneg %p5501_p7 }
 0x3a9   : > { %p5508_p3 = por %p5507_p6, %p5506_p1 }
 0x3ab   : > { %p5509_p5 = pnand %p5508_p3, %p5502_p8 }
 0x3ad   : > { %5512 = shalt.err (!%p5509_p5)
}
 0x3ae   : > { %s5572_s9 = smov 512   ;;  %s5573_s15 = smov 32  }
 0x3af   : > { %4201 = dma.vmem_to_hbm [thread:$0]  (%p4834_p4), %s5908_s28, %s5896_s14, %s5906_s13, %s4174_s25, %s5572_s9, %s5572_s9, %s5573_s15  }
 0x3b0 PF: > { %p4945_p11 = scmp.ge.s32.totalorder %s5559_s21, 2  ;;  %s4210_s16 = sand.u32 1, %s5547_s18  }
 0x3b1   : > { %p5981_p13 = scmp.ne.s32.totalorder %s5969_s6, 0  ;;  %s4211_s30 = scalar_lea.sflag [#allocation4], %s4210_s16 }
 0x3b3   : > { %p4936_p12 = pnand %p4945_p11, %p5981_p13 }
 0x3b5   : > { %5542 = dma.done.wait (!%p4936_p12), %s4211_s30, 1024  }
 0x3b6   : > { %5544 = vsyncadd (!%p4936_p12), %s4211_s30, 4294966272  ;;  %s5982_s21 = sld [smem:[#allocation15_spill]]  ;;  %s5983_s10 = sld [smem:[#allocation16_spill]] }
 0x3b7   : > { %s5984_s18 = smov %s5551_s19  ;;  %s5985_s19 = smov %s5555_s20 }
 0x3bc   : > { %p20_p0 = scmp.ge.s32.totalorder %s5982_s21, 5   ;;  %s5986_s20 = smov %s5983_s10 }
 0x3be   :  { %22 = sbr.rel (!%p20_p0) target bundleno = 7 (0x7), region = 97 }
 0x3c5   :  { %4216 = vsyncpa [#allocation3], 1 }
 0x3c6   :  { %4218 = vsyncpa [#allocation3 + $0x1], 1 }
 0x3c7   :  { %4219 = vsyncpa [#allocation6], 1 }
 0x3c8   :  { %4220 = vsyncpa [#allocation9], 1 }
 0x3c9   :  { %4221 = vsyncpa [#allocation4], 1 }
 0x3ca   :  { %4223 = vsyncpa [#allocation4 + $0x1], 1 }

</bundles_post_ra>
